<compile_context>
chip_gen: v5e
topology: v5e:2x2
jax: 0.10.0
libtpu: 0.0.40
codegen_flags: <defaults>
</compile_context>

<pallas_src>
import functools

import jax
import jax.numpy as jnp
from jax.experimental import pallas as pl
from jax.experimental.pallas import tpu as pltpu

EPS = 1e-5
LANE = 128
CPAD = 16                       # channel padding (bf16 sublane packing)
TK_MAX = 2048                   # K tile when the contraction must be split
VMEM_LIMIT = 48 * 1024 * 1024   # safe for v7x 64 MiB; raise to ~96 MiB on v5e/v6e


def _round_up(x, m):
    return ((x + m - 1) // m) * m


def _grid_cfg(M, Cp):
    """Lane tiling of the flattened spatial axis M (zero padded)."""
    tm_max = 2048 if Cp <= 64 else 512
    tm = min(tm_max, _round_up(M, 256))
    jt = -(-M // tm)
    Mp = jt * tm
    return tm, jt, Mp


def _ew_cfg(tm, jt, Cp):
    """Fatter lane tile for pure elementwise passes (must divide Mp)."""
    cap = 8192 if Cp <= 64 else 2048
    best = 1
    for d in range(1, jt + 1):
        if jt % d == 0 and tm * d <= cap:
            best = d
    return tm * best, jt // best


# ------------------------------ Pallas kernels ------------------------------

def _conv_bn_stats_k1_kernel(w_ref, p_ref, o_ref, s_ref, ss_ref, s_acc, ss_acc):
    """o[Cp,tm] = W[Cp,Kp] @ patches[Kp,tm] (bf16 in, f32 acc, bf16 out)
    with per-channel sum / sumsq fused into the epilogue.  grid = (jt,)."""
    j = pl.program_id(0)
    jt = pl.num_programs(0)

    y = jnp.dot(w_ref[...], p_ref[...], preferred_element_type=jnp.float32)
    o_ref[...] = y.astype(o_ref.dtype)

    @pl.when(j == 0)
    def _():
        s_acc[...] = jnp.zeros_like(s_acc)
        ss_acc[...] = jnp.zeros_like(ss_acc)

    sp = s_acc[...]
    ssp = ss_acc[...]
    for c in range(y.shape[1] // LANE):          # lane-chunked partial sums
        yc = y[:, c * LANE:(c + 1) * LANE]
        sp = sp + yc
        ssp = ssp + yc * yc
    s_acc[...] = sp
    ss_acc[...] = ssp

    @pl.when(j == jt - 1)
    def _():
        s_ref[...] = s_acc[...]
        ss_ref[...] = ss_acc[...]


def _conv_bn_stats_kernel(w_ref, p_ref, o_ref, s_ref, ss_ref,
                          acc_ref, s_acc, ss_acc, *, tk):
    """Same as above but with the contraction split over a trailing reduction
    axis; the full weight stays resident in VMEM and is sliced with pl.ds.
    grid = (jt, kt)."""
    j = pl.program_id(0)
    k = pl.program_id(1)
    jt = pl.num_programs(0)
    kt = pl.num_programs(1)

    @pl.when(k == 0)
    def _():
        acc_ref[...] = jnp.zeros_like(acc_ref)

    koff = pl.multiple_of(k * tk, LANE)
    acc_ref[...] += jnp.dot(w_ref[:, pl.ds(koff, tk)], p_ref[...],
                            preferred_element_type=jnp.float32)

    @pl.when(k == kt - 1)
    def _():
        y = acc_ref[...]
        o_ref[...] = y.astype(o_ref.dtype)

        @pl.when(j == 0)
        def _():
            s_acc[...] = jnp.zeros_like(s_acc)
            ss_acc[...] = jnp.zeros_like(ss_acc)

        sp = s_acc[...]
        ssp = ss_acc[...]
        for c in range(y.shape[1] // LANE):
            yc = y[:, c * LANE:(c + 1) * LANE]
            sp = sp + yc
            ssp = ssp + yc * yc
        s_acc[...] = sp
        ss_acc[...] = ssp

        @pl.when(j == jt - 1)
        def _():
            s_ref[...] = s_acc[...]
            ss_ref[...] = ss_acc[...]


def _bn_relu_stats_kernel(x_ref, sc_ref, sh_ref, o_ref, s_ref, ss_ref,
                          s_acc, ss_acc, *, relu):
    """y = [relu](x*scale + shift) in bf16, plus fused per-channel sum/sumsq
    of y (f32).  scale/shift arrive pre-broadcast to (Cp, 128) so every
    chunk is a plain vreg-aligned VALU op (no lane broadcast, no masking)."""
    j = pl.program_id(0)
    jt = pl.num_programs(0)

    @pl.when(j == 0)
    def _():
        s_acc[...] = jnp.zeros_like(s_acc)
        ss_acc[...] = jnp.zeros_like(ss_acc)

    sc = sc_ref[...]
    sh = sh_ref[...]
    sp = s_acc[...]
    ssp = ss_acc[...]
    for c in range(x_ref.shape[1] // LANE):
        sl = slice(c * LANE, (c + 1) * LANE)
        yc = x_ref[:, sl].astype(jnp.float32) * sc + sh
        if relu:
            yc = jnp.maximum(yc, 0.0)
        o_ref[:, sl] = yc.astype(o_ref.dtype)
        sp = sp + yc
        ssp = ssp + yc * yc
    s_acc[...] = sp
    ss_acc[...] = ssp

    @pl.when(j == jt - 1)
    def _():
        s_ref[...] = s_acc[...]
        ss_ref[...] = ss_acc[...]


def _bn_res_relu_kernel(x_ref, sc_ref, sh_ref, r_ref, rsc_ref, rsh_ref, o_ref):
    """out = relu( (x*sc+sh) + (r*rsc+rsh) ) -- bn2 apply + downsample-BN
    apply + residual add + final ReLU fused in one pass, bf16 in/out."""
    sc = sc_ref[...]
    sh = sh_ref[...]
    rsc = rsc_ref[...]
    rsh = rsh_ref[...]
    for c in range(x_ref.shape[1] // LANE):
        sl = slice(c * LANE, (c + 1) * LANE)
        yc = x_ref[:, sl].astype(jnp.float32) * sc + sh
        rc = r_ref[:, sl].astype(jnp.float32) * rsc + rsh
        o_ref[:, sl] = jnp.maximum(yc + rc, 0.0).astype(o_ref.dtype)


# ------------------------------ small helpers --------------------------------

def _bn_coeffs(mean, var, gamma, beta):
    inv = gamma.astype(jnp.float32) * jax.lax.rsqrt(var + EPS)
    return inv, beta.astype(jnp.float32) - mean * inv


def _lane_bcast(v, Cp):
    """Per-channel vector -> (Cp, 128) f32 (value replicated across lanes)."""
    v = jnp.pad(v.astype(jnp.float32), (0, Cp - v.shape[0]))
    return jnp.tile(v[:, None], (1, LANE))


def ncdhw_to_act(x):
    N, C, D, H, W = x.shape
    Cp = _round_up(C, CPAD)
    M = N * D * H * W
    tm, jt, Mp = _grid_cfg(M, Cp)
    flat = jnp.transpose(x, (1, 0, 2, 3, 4)).reshape(C, M).astype(jnp.bfloat16)
    flat = jnp.pad(flat, ((0, Cp - C), (0, Mp - M)))
    return {"flat": flat, "dims": (C, N, D, H, W), "tm": tm, "jt": jt}


def act_to_ncdhw(act):
    C, N, D, H, W = act["dims"]
    M = N * D * H * W
    y = act["flat"][:C, :M].astype(jnp.float32).reshape(C, N, D, H, W)
    return jnp.transpose(y, (1, 0, 2, 3, 4))


# --------------------------- conv3d + fused BN stats --------------------------

def conv3d_bn_stats(act, weight, stride, padding, pre=None):
    """Conv3d (no bias) on a C-major activation.  Returns (act_out, mean, var)
    where act_out is bf16 [Cp, Mp] and mean/var are the batch statistics of
    the raw conv output (fused into the matmul epilogue).

    `pre` = (scale, shift): a per-channel affine + ReLU applied to the input
    while building the patches (used to fold bn1+relu1 into conv2)."""
    flat = act["flat"]
    C, N, D, H, W = act["dims"]
    M_in = N * D * H * W
    Cout, Cin, kd, kh, kw = weight.shape
    assert Cin == C
    sd, sh, sw = stride
    pd, ph, pw = padding

    x = flat[:C, :M_in]
    if pre is not None:
        psc, psh = pre
        xf = x.astype(jnp.float32) * psc[:, None] + psh[:, None]
        x = jnp.maximum(xf, 0.0).astype(jnp.bfloat16)
    x5 = x.reshape(C, N, D, H, W)
    xp = jnp.pad(x5, ((0, 0), (0, 0), (pd, pd), (ph, ph), (pw, pw)))

    Do = (D + 2 * pd - kd) // sd + 1
    Ho = (H + 2 * ph - kh) // sh + 1
    Wo = (W + 2 * pw - kw) // sw + 1
    M = N * Do * Ho * Wo
    T = kd * kh * kw
    K = T * C

    # im2col in [K, M] (tap-major, Cin-minor), bf16.
    # TODO(synk): stream taps from HBM inside the kernel instead of
    # materializing the [K, M] expansion at the XLA level.
    cols = []
    for it in range(kd):
        for ih in range(kh):
            for iw in range(kw):
                cols.append(xp[:, :, it:it + sd * Do:sd,
                                     ih:ih + sh * Ho:sh,
                                     iw:iw + sw * Wo:sw])       # [C,N,Do,Ho,Wo]
    patches = jnp.stack(cols, axis=0).reshape(K, M)
    w_mat = jnp.transpose(weight, (0, 2, 3, 4, 1)).reshape(Cout, K)
    w_mat = w_mat.astype(jnp.bfloat16)

    Cp = _round_up(Cout, CPAD)
    tm, jt, Mp = _grid_cfg(M, Cp)
    Kp0 = _round_up(K, LANE)
    if Kp0 <= TK_MAX:
        tk, kt, Kp = Kp0, 1, Kp0
    else:
        tk = TK_MAX
        kt = -(-K // tk)
        Kp = kt * tk

    patches = jnp.pad(patches, ((0, Kp - K), (0, Mp - M)))
    w_mat = jnp.pad(w_mat, ((0, Cp - Cout), (0, Kp - K)))

    out_shapes = (jax.ShapeDtypeStruct((Cp, Mp), jnp.bfloat16),
                  jax.ShapeDtypeStruct((Cp, LANE), jnp.float32),
                  jax.ShapeDtypeStruct((Cp, LANE), jnp.float32))

    if kt == 1:
        grid = (jt,)
        in_specs = [pl.BlockSpec((Cp, Kp), lambda j: (0, 0)),      # resident W
                    pl.BlockSpec((Kp, tm), lambda j: (0, j))]
        out_specs = (pl.BlockSpec((Cp, tm), lambda j: (0, j)),
                     pl.BlockSpec((Cp, LANE), lambda j: (0, 0)),
                     pl.BlockSpec((Cp, LANE), lambda j: (0, 0)))
        scratch = [pltpu.VMEM((Cp, LANE), jnp.float32),
                   pltpu.VMEM((Cp, LANE), jnp.float32)]
        kernel = _conv_bn_stats_k1_kernel
        sem = ("arbitrary",)
    else:
        grid = (jt, kt)
        in_specs = [pl.BlockSpec((Cp, Kp), lambda j, k: (0, 0)),   # resident W
                    pl.BlockSpec((tk, tm), lambda j, k: (k, j))]
        out_specs = (pl.BlockSpec((Cp, tm), lambda j, k: (0, j)),
                     pl.BlockSpec((Cp, LANE), lambda j, k: (0, 0)),
                     pl.BlockSpec((Cp, LANE), lambda j, k: (0, 0)))
        scratch = [pltpu.VMEM((Cp, tm), jnp.float32),
                   pltpu.VMEM((Cp, LANE), jnp.float32),
                   pltpu.VMEM((Cp, LANE), jnp.float32)]
        kernel = functools.partial(_conv_bn_stats_kernel, tk=tk)
        sem = ("arbitrary", "arbitrary")

    out, s, ss = pl.pallas_call(
        kernel,
        out_shape=out_shapes,
        grid=grid,
        in_specs=in_specs,
        out_specs=out_specs,
        scratch_shapes=scratch,
        compiler_params=pltpu.CompilerParams(
            dimension_semantics=sem, vmem_limit_bytes=VMEM_LIMIT),
    )(w_mat, patches)

    # Padded patch columns are exactly zero -> they contribute nothing here.
    sum_c = jnp.sum(s, axis=1)[:Cout]
    sumsq_c = jnp.sum(ss, axis=1)[:Cout]
    mean = sum_c / M
    # TODO(synk): use shifted/Kahan accumulation for very large M to avoid
    # cancellation in E[x^2] - E[x]^2.
    var = jnp.maximum(sumsq_c / M - mean * mean, 0.0)

    act_out = {"flat": out, "dims": (Cout, N, Do, Ho, Wo), "tm": tm, "jt": jt}
    return act_out, mean, var


# ------------------------------ BN apply passes -------------------------------

def bn_relu_stats(act, mean, var, gamma, beta):
    """y = relu((x-mean)*inv*gamma + beta) in bf16, plus batch stats of y.
    The padded-lane contribution (x==0 there) is removed analytically."""
    flat = act["flat"]
    Cp, Mp = flat.shape
    C, N, D, H, W = act["dims"]
    M = N * D * H * W
    tme, jte = _ew_cfg(act["tm"], act["jt"], Cp)

    scale_c, shift_c = _bn_coeffs(mean, var, gamma, beta)
    sc = _lane_bcast(scale_c, Cp)
    sh = _lane_bcast(shift_c, Cp)

    row = pl.BlockSpec((Cp, tme), lambda j: (0, j))
    vec = pl.BlockSpec((Cp, LANE), lambda j: (0, 0))
    y, s, ss = pl.pallas_call(
        functools.partial(_bn_relu_stats_kernel, relu=True),
        out_shape=(jax.ShapeDtypeStruct((Cp, Mp), jnp.bfloat16),
                   jax.ShapeDtypeStruct((Cp, LANE), jnp.float32),
                   jax.ShapeDtypeStruct((Cp, LANE), jnp.float32)),
        grid=(jte,),
        in_specs=[row, vec, vec],
        out_specs=(row, vec, vec),
        scratch_shapes=[pltpu.VMEM((Cp, LANE), jnp.float32),
                        pltpu.VMEM((Cp, LANE), jnp.float32)],
        compiler_params=pltpu.CompilerParams(
            dimension_semantics=("arbitrary",), vmem_limit_bytes=VMEM_LIMIT),
    )(flat, sc, sh)

    npad = Mp - M
    ypad = jnp.maximum(shift_c, 0.0)          # padded input columns are 0
    sum_c = jnp.sum(s, axis=1)[:C] - npad * ypad
    sumsq_c = jnp.sum(ss, axis=1)[:C] - npad * ypad * ypad
    mean_y = sum_c / M
    var_y = jnp.maximum(sumsq_c / M - mean_y * mean_y, 0.0)
    return {**act, "flat": y}, mean_y, var_y


def bn_add_relu(act_x, scale_x, shift_x, act_r, scale_r, shift_r):
    """out = relu( (x*scale_x+shift_x) + (r*scale_r+shift_r) ), bf16 in/out."""
    flat = act_x["flat"]
    Cp, Mp = flat.shape
    assert act_r["flat"].shape == flat.shape
    tme, jte = _ew_cfg(act_x["tm"], act_x["jt"], Cp)

    row = pl.BlockSpec((Cp, tme), lambda j: (0, j))
    vec = pl.BlockSpec((Cp, LANE), lambda j: (0, 0))
    y = pl.pallas_call(
        _bn_res_relu_kernel,
        out_shape=jax.ShapeDtypeStruct((Cp, Mp), jnp.bfloat16),
        grid=(jte,),
        in_specs=[row, vec, vec, row, vec, vec],
        out_specs=row,
        compiler_params=pltpu.CompilerParams(
            dimension_semantics=("arbitrary",), vmem_limit_bytes=VMEM_LIMIT),
    )(flat, _lane_bcast(scale_x, Cp), _lane_bcast(shift_x, Cp),
      act_r["flat"], _lane_bcast(scale_r, Cp), _lane_bcast(shift_r, Cp))
    return {**act_x, "flat": y}


# ------------------------- module forward functions --------------------------

def res_block(act_x, p, kernel_size, downsample):
    pad = kernel_size // 2
    pd3 = (pad, pad, pad)
    s1 = (2, 2, 2) if downsample else (1, 1, 1)

    # conv1 (raw conv, fused stats) then its BN+ReLU (fused stats of y1)
    a1, m_a1, v_a1 = conv3d_bn_stats(act_x, p["conv1"]["w"], s1, pd3)
    y1, m_y1, v_y1 = bn_relu_stats(a1, m_a1, v_a1,
                                   p["conv1"]["gamma"], p["conv1"]["beta"])

    # bn1 + relu1 folded into conv2's patch construction
    s_b1, t_b1 = _bn_coeffs(m_y1, v_y1, p["bn1_gamma"], p["bn1_beta"])
    a2, m_a2, v_a2 = conv3d_bn_stats(y1, p["conv2"]["w"], (1, 1, 1), pd3,
                                     pre=(s_b1, t_b1))
    y2, m_y2, v_y2 = bn_relu_stats(a2, m_a2, v_a2,
                                   p["conv2"]["gamma"], p["conv2"]["beta"])
    s2, t2 = _bn_coeffs(m_y2, v_y2, p["bn2_gamma"], p["bn2_beta"])

    if downsample:
        ad, m_ad, v_ad = conv3d_bn_stats(act_x, p["dsconv"]["w"],
                                         (2, 2, 2), (0, 0, 0))
        yd, m_yd, v_yd = bn_relu_stats(ad, m_ad, v_ad,
                                       p["dsconv"]["gamma"], p["dsconv"]["beta"])
        # downsamplebn folded into the residual kernel
        sr, tr = _bn_coeffs(m_yd, v_yd, p["dsbn_gamma"], p["dsbn_beta"])
        act_r = yd
    else:
        C = act_x["dims"][0]
        sr = jnp.ones((C,), jnp.float32)
        tr = jnp.zeros((C,), jnp.float32)
        act_r = act_x

    # outrelu(x + bn2(y2)): dual affine + residual add + ReLU in one pass
    return bn_add_relu(y2, s2, t2, act_r, sr, tr)


def res_layer(x_ncdhw, params, kernel_size, downsample):
    act = ncdhw_to_act(x_ncdhw)
    act = res_block(act, params["block1"], kernel_size, downsample)
    for bp in params["blocks"]:
        act = res_block(act, bp, kernel_size, False)
    return act_to_ncdhw(act)


# -------------------------------- param init ---------------------------------

def init_stconv(key, cin, cout, k):
    kw, kg, kb = jax.random.split(key, 3)
    return {
        "w": 0.1 * jax.random.normal(kw, (cout, cin, k, k, k), jnp.float32),
        "gamma": 1.0 + 0.1 * jax.random.normal(kg, (cout,), jnp.float32),
        "beta": 0.1 * jax.random.normal(kb, (cout,), jnp.float32),
    }


def init_block(key, cin, cout, k, downsample):
    ks = jax.random.split(key, 8)
    p = {
        "conv1": init_stconv(ks[0], cin, cout, k),
        "bn1_gamma": 1.0 + 0.1 * jax.random.normal(ks[1], (cout,), jnp.float32),
        "bn1_beta": 0.1 * jax.random.normal(ks[2], (cout,), jnp.float32),
        "conv2": init_stconv(ks[3], cout, cout, k),
        "bn2_gamma": 1.0 + 0.1 * jax.random.normal(ks[4], (cout,), jnp.float32),
        "bn2_beta": 0.1 * jax.random.normal(ks[5], (cout,), jnp.float32),
    }
    if downsample:
        p["dsconv"] = init_stconv(ks[6], cin, cout, 1)
        kg, kb = jax.random.split(ks[7])
        p["dsbn_gamma"] = 1.0 + 0.1 * jax.random.normal(kg, (cout,), jnp.float32)
        p["dsbn_beta"] = 0.1 * jax.random.normal(kb, (cout,), jnp.float32)
    return p


# ------------------------------------ main ------------------------------------

if __name__ == "__main__":
    key = jax.random.PRNGKey(0)
    k_x, k_p = jax.random.split(key)

    # SpatioTemporalResLayer(in=4, out=8, kernel_size=3, layer_size=2,
    #                        downsample=True) at small shapes.
    N, Cin, Cout = 2, 4, 8
    D, H, W = 8, 16, 16
    kernel_size, layer_size, downsample = 3, 2, True

    x = jax.random.normal(k_x, (N, Cin, D, H, W), jnp.float32)  # NCDHW

    kp1, kp2 = jax.random.split(k_p)
    params = {
        "block1": init_block(kp1, Cin, Cout, kernel_size, downsample),
        "blocks": [init_block(bk, Cout, Cout, kernel_size, False)
                   for bk in jax.random.split(kp2, layer_size - 1)],
    }

    fwd = jax.jit(functools.partial(res_layer, kernel_size=kernel_size,
                                    downsample=downsample))
    out = jax.block_until_ready(fwd(x, params))

    if downsample:
        pad = kernel_size // 2
        Do = (D + 2 * pad - kernel_size) // 2 + 1
        Ho = (H + 2 * pad - kernel_size) // 2 + 1
        Wo = (W + 2 * pad - kernel_size) // 2 + 1
        expected = (N, Cout, Do, Ho, Wo)
    else:
        expected = (N, Cout, D, H, W)
    assert out.shape == expected, (out.shape, expected)
    assert bool(jnp.all(jnp.isfinite(out)))
    assert bool(jnp.all(out >= 0.0))  # final ReLU

    print("KERNEL_OK")
</pallas_src>

<mosaic_0001>
module attributes {stable_mosaic.version = 11 : i64} {
  func.func @_conv_bn_stats_k1_kernel(%arg0: i32, %arg1: memref<16x128xbf16, #tpu.memory_space<vmem>>, %arg2: memref<128x512xbf16, #tpu.memory_space<vmem>>, %arg3: memref<16x512xbf16, #tpu.memory_space<vmem>>, %arg4: memref<16x128xf32, #tpu.memory_space<vmem>>, %arg5: memref<16x128xf32, #tpu.memory_space<vmem>>, %arg6: memref<16x128xf32, #tpu.memory_space<vmem>>, %arg7: memref<16x128xf32, #tpu.memory_space<vmem>>) attributes {dimension_semantics = [#tpu.dimension_semantics<arbitrary>], iteration_bounds = array<i64: 1>, scalar_prefetch = 0 : i64, scratch_operands = 2 : i64, tpu.core_type = #tpu.core_type<tc>, window_params = [{pipeline_mode = #tpu.pipeline_mode<synchronous>, transform_indices = @transform_0, window_bounds = array<i64: 16, 128>}, {transform_indices = @transform_1, window_bounds = array<i64: 128, 512>}, {transform_indices = @transform_2, window_bounds = array<i64: 16, 512>}, {pipeline_mode = #tpu.pipeline_mode<synchronous>, transform_indices = @transform_3, window_bounds = array<i64: 16, 128>}, {pipeline_mode = #tpu.pipeline_mode<synchronous>, transform_indices = @transform_4, window_bounds = array<i64: 16, 128>}]} {
    %c0 = arith.constant 0 : index
    %c0_0 = arith.constant 0 : index
    %0 = vector.load %arg1[%c0, %c0_0] : memref<16x128xbf16, #tpu.memory_space<vmem>>, vector<16x128xbf16>
    %c0_1 = arith.constant 0 : index
    %c0_2 = arith.constant 0 : index
    %1 = vector.load %arg2[%c0_1, %c0_2] : memref<128x512xbf16, #tpu.memory_space<vmem>>, vector<128x512xbf16>
    %cst = arith.constant dense<0.000000e+00> : vector<16x512xf32>
    %2 = tpu.matmul %0, %1, %cst {dimension_numbers = #tpu.dot_dimension_numbers<[1], [0], [0], [1], [0, 0, 1, 1], [], []>} : vector<16x128xbf16>, vector<128x512xbf16>, vector<16x512xf32> -> vector<16x512xf32>
    %3 = arith.truncf %2 : vector<16x512xf32> to vector<16x512xbf16>
    %c0_3 = arith.constant 0 : index
    %c0_4 = arith.constant 0 : index
    %4 = vector.load %arg3[%c0_3, %c0_4] : memref<16x512xbf16, #tpu.memory_space<vmem>>, vector<16x512xbf16>
    tpu.vector_store %arg3[%c0_3, %c0_4], %3 {strides = array<i32>} : memref<16x512xbf16, #tpu.memory_space<vmem>>, vector<16x512xbf16>,
    %c0_i32 = arith.constant 0 : i32
    %5 = arith.cmpi eq, %arg0, %c0_i32 : i32
    %6 = arith.extui %5 : i1 to i32
    %c0_i32_5 = arith.constant 0 : i32
    %7 = arith.cmpi ne, %6, %c0_i32_5 : i32
    scf.if %7 {
      %cst_16 = arith.constant 0.000000e+00 : f32
      %31 = vector.broadcast %cst_16 : f32 to vector<16x128xf32>
      %c0_17 = arith.constant 0 : index
      %c0_18 = arith.constant 0 : index
      %32 = vector.load %arg6[%c0_17, %c0_18] : memref<16x128xf32, #tpu.memory_space<vmem>>, vector<16x128xf32>
      tpu.vector_store %arg6[%c0_17, %c0_18], %31 {strides = array<i32>} : memref<16x128xf32, #tpu.memory_space<vmem>>, vector<16x128xf32>,
      %cst_19 = arith.constant 0.000000e+00 : f32
      %33 = vector.broadcast %cst_19 : f32 to vector<16x128xf32>
      %c0_20 = arith.constant 0 : index
      %c0_21 = arith.constant 0 : index
      %34 = vector.load %arg7[%c0_20, %c0_21] : memref<16x128xf32, #tpu.memory_space<vmem>>, vector<16x128xf32>
      tpu.vector_store %arg7[%c0_20, %c0_21], %33 {strides = array<i32>} : memref<16x128xf32, #tpu.memory_space<vmem>>, vector<16x128xf32>,
    } else {
    }
    %c0_6 = arith.constant 0 : index
    %c0_7 = arith.constant 0 : index
    %8 = vector.load %arg6[%c0_6, %c0_7] : memref<16x128xf32, #tpu.memory_space<vmem>>, vector<16x128xf32>
    %c0_8 = arith.constant 0 : index
    %c0_9 = arith.constant 0 : index
    %9 = vector.load %arg7[%c0_8, %c0_9] : memref<16x128xf32, #tpu.memory_space<vmem>>, vector<16x128xf32>
    %10 = vector.extract_strided_slice %2 {offsets = [0, 0], sizes = [16, 128], strides = [1, 1]} : vector<16x512xf32> to vector<16x128xf32>
    %11 = arith.addf %8, %10 : vector<16x128xf32>
    %12 = arith.mulf %10, %10 : vector<16x128xf32>
    %13 = arith.addf %9, %12 : vector<16x128xf32>
    %14 = vector.extract_strided_slice %2 {offsets = [0, 128], sizes = [16, 128], strides = [1, 1]} : vector<16x512xf32> to vector<16x128xf32>
    %15 = arith.addf %11, %14 : vector<16x128xf32>
    %16 = arith.mulf %14, %14 : vector<16x128xf32>
    %17 = arith.addf %13, %16 : vector<16x128xf32>
    %18 = vector.extract_strided_slice %2 {offsets = [0, 256], sizes = [16, 128], strides = [1, 1]} : vector<16x512xf32> to vector<16x128xf32>
    %19 = arith.addf %15, %18 : vector<16x128xf32>
    %20 = arith.mulf %18, %18 : vector<16x128xf32>
    %21 = arith.addf %17, %20 : vector<16x128xf32>
    %22 = vector.extract_strided_slice %2 {offsets = [0, 384], sizes = [16, 128], strides = [1, 1]} : vector<16x512xf32> to vector<16x128xf32>
    %23 = arith.addf %19, %22 : vector<16x128xf32>
    %24 = arith.mulf %22, %22 : vector<16x128xf32>
    %25 = arith.addf %21, %24 : vector<16x128xf32>
    %c0_10 = arith.constant 0 : index
    %c0_11 = arith.constant 0 : index
    %26 = vector.load %arg6[%c0_10, %c0_11] : memref<16x128xf32, #tpu.memory_space<vmem>>, vector<16x128xf32>
    tpu.vector_store %arg6[%c0_10, %c0_11], %23 {strides = array<i32>} : memref<16x128xf32, #tpu.memory_space<vmem>>, vector<16x128xf32>,
    %c0_12 = arith.constant 0 : index
    %c0_13 = arith.constant 0 : index
    %27 = vector.load %arg7[%c0_12, %c0_13] : memref<16x128xf32, #tpu.memory_space<vmem>>, vector<16x128xf32>
    tpu.vector_store %arg7[%c0_12, %c0_13], %25 {strides = array<i32>} : memref<16x128xf32, #tpu.memory_space<vmem>>, vector<16x128xf32>,
    %c0_i32_14 = arith.constant 0 : i32
    %28 = arith.cmpi eq, %arg0, %c0_i32_14 : i32
    %29 = arith.extui %28 : i1 to i32
    %c0_i32_15 = arith.constant 0 : i32
    %30 = arith.cmpi ne, %29, %c0_i32_15 : i32
    scf.if %30 {
      %c0_16 = arith.constant 0 : index
      %c0_17 = arith.constant 0 : index
      %31 = vector.load %arg6[%c0_16, %c0_17] : memref<16x128xf32, #tpu.memory_space<vmem>>, vector<16x128xf32>
      %c0_18 = arith.constant 0 : index
      %c0_19 = arith.constant 0 : index
      %32 = vector.load %arg4[%c0_18, %c0_19] : memref<16x128xf32, #tpu.memory_space<vmem>>, vector<16x128xf32>
      tpu.vector_store %arg4[%c0_18, %c0_19], %31 {strides = array<i32>} : memref<16x128xf32, #tpu.memory_space<vmem>>, vector<16x128xf32>,
      %c0_20 = arith.constant 0 : index
      %c0_21 = arith.constant 0 : index
      %33 = vector.load %arg7[%c0_20, %c0_21] : memref<16x128xf32, #tpu.memory_space<vmem>>, vector<16x128xf32>
      %c0_22 = arith.constant 0 : index
      %c0_23 = arith.constant 0 : index
      %34 = vector.load %arg5[%c0_22, %c0_23] : memref<16x128xf32, #tpu.memory_space<vmem>>, vector<16x128xf32>
      tpu.vector_store %arg5[%c0_22, %c0_23], %33 {strides = array<i32>} : memref<16x128xf32, #tpu.memory_space<vmem>>, vector<16x128xf32>,
    } else {
    }
    return
  }
  func.func @transform_0(%arg0: i32) -> (i32, i32) {
    %c0_i32 = arith.constant 0 : i32
    %c0_i32_0 = arith.constant 0 : i32
    %c0_i32_1 = arith.constant 0 : i32
    return %c0_i32, %c0_i32_0 : i32, i32
  }
  func.func @transform_1(%arg0: i32) -> (i32, i32) {
    %c0_i32 = arith.constant 0 : i32
    %c0_i32_0 = arith.constant 0 : i32
    return %c0_i32, %arg0 : i32, i32
  }
  func.func @transform_2(%arg0: i32) -> (i32, i32) {
    %c0_i32 = arith.constant 0 : i32
    %c0_i32_0 = arith.constant 0 : i32
    return %c0_i32, %arg0 : i32, i32
  }
  func.func @transform_3(%arg0: i32) -> (i32, i32) {
    %c0_i32 = arith.constant 0 : i32
    %c0_i32_0 = arith.constant 0 : i32
    %c0_i32_1 = arith.constant 0 : i32
    return %c0_i32, %c0_i32_0 : i32, i32
  }
  func.func @transform_4(%arg0: i32) -> (i32, i32) {
    %c0_i32 = arith.constant 0 : i32
    %c0_i32_0 = arith.constant 0 : i32
    %c0_i32_1 = arith.constant 0 : i32
    return %c0_i32, %c0_i32_0 : i32, i32
  }
}

module attributes {stable_mosaic.version = 11 : i64} {
  func.func @_bn_relu_stats_kernel(%arg0: i32, %arg1: memref<16x512xbf16, #tpu.memory_space<vmem>>, %arg2: memref<16x128xf32, #tpu.memory_space<vmem>>, %arg3: memref<16x128xf32, #tpu.memory_space<vmem>>, %arg4: memref<16x512xbf16, #tpu.memory_space<vmem>>, %arg5: memref<16x128xf32, #tpu.memory_space<vmem>>, %arg6: memref<16x128xf32, #tpu.memory_space<vmem>>, %arg7: memref<16x128xf32, #tpu.memory_space<vmem>>, %arg8: memref<16x128xf32, #tpu.memory_space<vmem>>) attributes {dimension_semantics = [#tpu.dimension_semantics<arbitrary>], iteration_bounds = array<i64: 1>, scalar_prefetch = 0 : i64, scratch_operands = 2 : i64, tpu.core_type = #tpu.core_type<tc>, window_params = [{transform_indices = @transform_0, window_bounds = array<i64: 16, 512>}, {pipeline_mode = #tpu.pipeline_mode<synchronous>, transform_indices = @transform_1, window_bounds = array<i64: 16, 128>}, {pipeline_mode = #tpu.pipeline_mode<synchronous>, transform_indices = @transform_2, window_bounds = array<i64: 16, 128>}, {transform_indices = @transform_3, window_bounds = array<i64: 16, 512>}, {pipeline_mode = #tpu.pipeline_mode<synchronous>, transform_indices = @transform_4, window_bounds = array<i64: 16, 128>}, {pipeline_mode = #tpu.pipeline_mode<synchronous>, transform_indices = @transform_5, window_bounds = array<i64: 16, 128>}]} {
    %c0_i32 = arith.constant 0 : i32
    %0 = arith.cmpi eq, %arg0, %c0_i32 : i32
    %1 = arith.extui %0 : i1 to i32
    %c0_i32_0 = arith.constant 0 : i32
    %2 = arith.cmpi ne, %1, %c0_i32_0 : i32
    scf.if %2 {
      %cst_30 = arith.constant 0.000000e+00 : f32
      %56 = vector.broadcast %cst_30 : f32 to vector<16x128xf32>
      %c0_31 = arith.constant 0 : index
      %c0_32 = arith.constant 0 : index
      %57 = vector.load %arg7[%c0_31, %c0_32] : memref<16x128xf32, #tpu.memory_space<vmem>>, vector<16x128xf32>
      tpu.vector_store %arg7[%c0_31, %c0_32], %56 {strides = array<i32>} : memref<16x128xf32, #tpu.memory_space<vmem>>, vector<16x128xf32>,
      %cst_33 = arith.constant 0.000000e+00 : f32
      %58 = vector.broadcast %cst_33 : f32 to vector<16x128xf32>
      %c0_34 = arith.constant 0 : index
      %c0_35 = arith.constant 0 : index
      %59 = vector.load %arg8[%c0_34, %c0_35] : memref<16x128xf32, #tpu.memory_space<vmem>>, vector<16x128xf32>
      tpu.vector_store %arg8[%c0_34, %c0_35], %58 {strides = array<i32>} : memref<16x128xf32, #tpu.memory_space<vmem>>, vector<16x128xf32>,
    } else {
    }
    %c0 = arith.constant 0 : index
    %c0_1 = arith.constant 0 : index
    %3 = vector.load %arg2[%c0, %c0_1] : memref<16x128xf32, #tpu.memory_space<vmem>>, vector<16x128xf32>
    %c0_2 = arith.constant 0 : index
    %c0_3 = arith.constant 0 : index
    %4 = vector.load %arg3[%c0_2, %c0_3] : memref<16x128xf32, #tpu.memory_space<vmem>>, vector<16x128xf32>
    %c0_4 = arith.constant 0 : index
    %c0_5 = arith.constant 0 : index
    %5 = vector.load %arg7[%c0_4, %c0_5] : memref<16x128xf32, #tpu.memory_space<vmem>>, vector<16x128xf32>
    %c0_6 = arith.constant 0 : index
    %c0_7 = arith.constant 0 : index
    %6 = vector.load %arg8[%c0_6, %c0_7] : memref<16x128xf32, #tpu.memory_space<vmem>>, vector<16x128xf32>
    %c0_8 = arith.constant 0 : index
    %c0_9 = arith.constant 0 : index
    %7 = vector.load %arg1[%c0_8, %c0_9] : memref<16x512xbf16, #tpu.memory_space<vmem>>, vector<16x128xbf16>
    %8 = arith.extf %7 : vector<16x128xbf16> to vector<16x128xf32>
    %9 = arith.mulf %8, %3 : vector<16x128xf32>
    %10 = arith.addf %9, %4 : vector<16x128xf32>
    %cst = arith.constant 0.000000e+00 : f32
    %11 = vector.broadcast %cst : f32 to vector<16x128xf32>
    %12 = arith.maximumf %10, %11 : vector<16x128xf32>
    %13 = arith.truncf %12 : vector<16x128xf32> to vector<16x128xbf16>
    %c0_10 = arith.constant 0 : index
    %c0_11 = arith.constant 0 : index
    %14 = vector.load %arg4[%c0_10, %c0_11] : memref<16x512xbf16, #tpu.memory_space<vmem>>, vector<16x128xbf16>
    tpu.vector_store %arg4[%c0_10, %c0_11], %13 {strides = array<i32>} : memref<16x512xbf16, #tpu.memory_space<vmem>>, vector<16x128xbf16>,
    %15 = arith.addf %5, %12 : vector<16x128xf32>
    %16 = arith.mulf %12, %12 : vector<16x128xf32>
    %17 = arith.addf %6, %16 : vector<16x128xf32>
    %c0_12 = arith.constant 0 : index
    %c128 = arith.constant 128 : index
    %18 = vector.load %arg1[%c0_12, %c128] : memref<16x512xbf16, #tpu.memory_space<vmem>>, vector<16x128xbf16>
    %19 = arith.extf %18 : vector<16x128xbf16> to vector<16x128xf32>
    %20 = arith.mulf %19, %3 : vector<16x128xf32>
    %21 = arith.addf %20, %4 : vector<16x128xf32>
    %cst_13 = arith.constant 0.000000e+00 : f32
    %22 = vector.broadcast %cst_13 : f32 to vector<16x128xf32>
    %23 = arith.maximumf %21, %22 : vector<16x128xf32>
    %24 = arith.truncf %23 : vector<16x128xf32> to vector<16x128xbf16>
    %c0_14 = arith.constant 0 : index
    %c128_15 = arith.constant 128 : index
    %25 = vector.load %arg4[%c0_14, %c128_15] : memref<16x512xbf16, #tpu.memory_space<vmem>>, vector<16x128xbf16>
    tpu.vector_store %arg4[%c0_14, %c128_15], %24 {strides = array<i32>} : memref<16x512xbf16, #tpu.memory_space<vmem>>, vector<16x128xbf16>,
    %26 = arith.addf %15, %23 : vector<16x128xf32>
    %27 = arith.mulf %23, %23 : vector<16x128xf32>
    %28 = arith.addf %17, %27 : vector<16x128xf32>
    %c0_16 = arith.constant 0 : index
    %c256 = arith.constant 256 : index
    %29 = vector.load %arg1[%c0_16, %c256] : memref<16x512xbf16, #tpu.memory_space<vmem>>, vector<16x128xbf16>
    %30 = arith.extf %29 : vector<16x128xbf16> to vector<16x128xf32>
    %31 = arith.mulf %30, %3 : vector<16x128xf32>
    %32 = arith.addf %31, %4 : vector<16x128xf32>
    %cst_17 = arith.constant 0.000000e+00 : f32
    %33 = vector.broadcast %cst_17 : f32 to vector<16x128xf32>
    %34 = arith.maximumf %32, %33 : vector<16x128xf32>
    %35 = arith.truncf %34 : vector<16x128xf32> to vector<16x128xbf16>
    %c0_18 = arith.constant 0 : index
    %c256_19 = arith.constant 256 : index
    %36 = vector.load %arg4[%c0_18, %c256_19] : memref<16x512xbf16, #tpu.memory_space<vmem>>, vector<16x128xbf16>
    tpu.vector_store %arg4[%c0_18, %c256_19], %35 {strides = array<i32>} : memref<16x512xbf16, #tpu.memory_space<vmem>>, vector<16x128xbf16>,
    %37 = arith.addf %26, %34 : vector<16x128xf32>
    %38 = arith.mulf %34, %34 : vector<16x128xf32>
    %39 = arith.addf %28, %38 : vector<16x128xf32>
    %c0_20 = arith.constant 0 : index
    %c384 = arith.constant 384 : index
    %40 = vector.load %arg1[%c0_20, %c384] : memref<16x512xbf16, #tpu.memory_space<vmem>>, vector<16x128xbf16>
    %41 = arith.extf %40 : vector<16x128xbf16> to vector<16x128xf32>
    %42 = arith.mulf %41, %3 : vector<16x128xf32>
    %43 = arith.addf %42, %4 : vector<16x128xf32>
    %cst_21 = arith.constant 0.000000e+00 : f32
    %44 = vector.broadcast %cst_21 : f32 to vector<16x128xf32>
    %45 = arith.maximumf %43, %44 : vector<16x128xf32>
    %46 = arith.truncf %45 : vector<16x128xf32> to vector<16x128xbf16>
    %c0_22 = arith.constant 0 : index
    %c384_23 = arith.constant 384 : index
    %47 = vector.load %arg4[%c0_22, %c384_23] : memref<16x512xbf16, #tpu.memory_space<vmem>>, vector<16x128xbf16>
    tpu.vector_store %arg4[%c0_22, %c384_23], %46 {strides = array<i32>} : memref<16x512xbf16, #tpu.memory_space<vmem>>, vector<16x128xbf16>,
    %48 = arith.addf %37, %45 : vector<16x128xf32>
    %49 = arith.mulf %45, %45 : vector<16x128xf32>
    %50 = arith.addf %39, %49 : vector<16x128xf32>
    %c0_24 = arith.constant 0 : index
    %c0_25 = arith.constant 0 : index
    %51 = vector.load %arg7[%c0_24, %c0_25] : memref<16x128xf32, #tpu.memory_space<vmem>>, vector<16x128xf32>
    tpu.vector_store %arg7[%c0_24, %c0_25], %48 {strides = array<i32>} : memref<16x128xf32, #tpu.memory_space<vmem>>, vector<16x128xf32>,
    %c0_26 = arith.constant 0 : index
    %c0_27 = arith.constant 0 : index
    %52 = vector.load %arg8[%c0_26, %c0_27] : memref<16x128xf32, #tpu.memory_space<vmem>>, vector<16x128xf32>
    tpu.vector_store %arg8[%c0_26, %c0_27], %50 {strides = array<i32>} : memref<16x128xf32, #tpu.memory_space<vmem>>, vector<16x128xf32>,
    %c0_i32_28 = arith.constant 0 : i32
    %53 = arith.cmpi eq, %arg0, %c0_i32_28 : i32
    %54 = arith.extui %53 : i1 to i32
    %c0_i32_29 = arith.constant 0 : i32
    %55 = arith.cmpi ne, %54, %c0_i32_29 : i32
    scf.if %55 {
      %c0_30 = arith.constant 0 : index
      %c0_31 = arith.constant 0 : index
      %56 = vector.load %arg7[%c0_30, %c0_31] : memref<16x128xf32, #tpu.memory_space<vmem>>, vector<16x128xf32>
      %c0_32 = arith.constant 0 : index
      %c0_33 = arith.constant 0 : index
      %57 = vector.load %arg5[%c0_32, %c0_33] : memref<16x128xf32, #tpu.memory_space<vmem>>, vector<16x128xf32>
      tpu.vector_store %arg5[%c0_32, %c0_33], %56 {strides = array<i32>} : memref<16x128xf32, #tpu.memory_space<vmem>>, vector<16x128xf32>,
      %c0_34 = arith.constant 0 : index
      %c0_35 = arith.constant 0 : index
      %58 = vector.load %arg8[%c0_34, %c0_35] : memref<16x128xf32, #tpu.memory_space<vmem>>, vector<16x128xf32>
      %c0_36 = arith.constant 0 : index
      %c0_37 = arith.constant 0 : index
      %59 = vector.load %arg6[%c0_36, %c0_37] : memref<16x128xf32, #tpu.memory_space<vmem>>, vector<16x128xf32>
      tpu.vector_store %arg6[%c0_36, %c0_37], %58 {strides = array<i32>} : memref<16x128xf32, #tpu.memory_space<vmem>>, vector<16x128xf32>,
    } else {
    }
    return
  }
  func.func @transform_0(%arg0: i32) -> (i32, i32) {
    %c0_i32 = arith.constant 0 : i32
    %c0_i32_0 = arith.constant 0 : i32
    return %c0_i32, %arg0 : i32, i32
  }
  func.func @transform_1(%arg0: i32) -> (i32, i32) {
    %c0_i32 = arith.constant 0 : i32
    %c0_i32_0 = arith.constant 0 : i32
    %c0_i32_1 = arith.constant 0 : i32
    return %c0_i32, %c0_i32_0 : i32, i32
  }
  func.func @transform_2(%arg0: i32) -> (i32, i32) {
    %c0_i32 = arith.constant 0 : i32
    %c0_i32_0 = arith.constant 0 : i32
    %c0_i32_1 = arith.constant 0 : i32
    return %c0_i32, %c0_i32_0 : i32, i32
  }
  func.func @transform_3(%arg0: i32) -> (i32, i32) {
    %c0_i32 = arith.constant 0 : i32
    %c0_i32_0 = arith.constant 0 : i32
    return %c0_i32, %arg0 : i32, i32
  }
  func.func @transform_4(%arg0: i32) -> (i32, i32) {
    %c0_i32 = arith.constant 0 : i32
    %c0_i32_0 = arith.constant 0 : i32
    %c0_i32_1 = arith.constant 0 : i32
    return %c0_i32, %c0_i32_0 : i32, i32
  }
  func.func @transform_5(%arg0: i32) -> (i32, i32) {
    %c0_i32 = arith.constant 0 : i32
    %c0_i32_0 = arith.constant 0 : i32
    %c0_i32_1 = arith.constant 0 : i32
    return %c0_i32, %c0_i32_0 : i32, i32
  }
}

module attributes {stable_mosaic.version = 11 : i64} {
  func.func @_conv_bn_stats_k1_kernel(%arg0: i32, %arg1: memref<16x256xbf16, #tpu.memory_space<vmem>>, %arg2: memref<256x512xbf16, #tpu.memory_space<vmem>>, %arg3: memref<16x512xbf16, #tpu.memory_space<vmem>>, %arg4: memref<16x128xf32, #tpu.memory_space<vmem>>, %arg5: memref<16x128xf32, #tpu.memory_space<vmem>>, %arg6: memref<16x128xf32, #tpu.memory_space<vmem>>, %arg7: memref<16x128xf32, #tpu.memory_space<vmem>>) attributes {dimension_semantics = [#tpu.dimension_semantics<arbitrary>], iteration_bounds = array<i64: 1>, scalar_prefetch = 0 : i64, scratch_operands = 2 : i64, tpu.core_type = #tpu.core_type<tc>, window_params = [{pipeline_mode = #tpu.pipeline_mode<synchronous>, transform_indices = @transform_0, window_bounds = array<i64: 16, 256>}, {transform_indices = @transform_1, window_bounds = array<i64: 256, 512>}, {transform_indices = @transform_2, window_bounds = array<i64: 16, 512>}, {pipeline_mode = #tpu.pipeline_mode<synchronous>, transform_indices = @transform_3, window_bounds = array<i64: 16, 128>}, {pipeline_mode = #tpu.pipeline_mode<synchronous>, transform_indices = @transform_4, window_bounds = array<i64: 16, 128>}]} {
    %c0 = arith.constant 0 : index
    %c0_0 = arith.constant 0 : index
    %0 = vector.load %arg1[%c0, %c0_0] : memref<16x256xbf16, #tpu.memory_space<vmem>>, vector<16x256xbf16>
    %c0_1 = arith.constant 0 : index
    %c0_2 = arith.constant 0 : index
    %1 = vector.load %arg2[%c0_1, %c0_2] : memref<256x512xbf16, #tpu.memory_space<vmem>>, vector<256x512xbf16>
    %cst = arith.constant dense<0.000000e+00> : vector<16x512xf32>
    %2 = tpu.matmul %0, %1, %cst {dimension_numbers = #tpu.dot_dimension_numbers<[1], [0], [0], [1], [0, 0, 1, 1], [], []>} : vector<16x256xbf16>, vector<256x512xbf16>, vector<16x512xf32> -> vector<16x512xf32>
    %3 = arith.truncf %2 : vector<16x512xf32> to vector<16x512xbf16>
    %c0_3 = arith.constant 0 : index
    %c0_4 = arith.constant 0 : index
    %4 = vector.load %arg3[%c0_3, %c0_4] : memref<16x512xbf16, #tpu.memory_space<vmem>>, vector<16x512xbf16>
    tpu.vector_store %arg3[%c0_3, %c0_4], %3 {strides = array<i32>} : memref<16x512xbf16, #tpu.memory_space<vmem>>, vector<16x512xbf16>,
    %c0_i32 = arith.constant 0 : i32
    %5 = arith.cmpi eq, %arg0, %c0_i32 : i32
    %6 = arith.extui %5 : i1 to i32
    %c0_i32_5 = arith.constant 0 : i32
    %7 = arith.cmpi ne, %6, %c0_i32_5 : i32
    scf.if %7 {
      %cst_16 = arith.constant 0.000000e+00 : f32
      %31 = vector.broadcast %cst_16 : f32 to vector<16x128xf32>
      %c0_17 = arith.constant 0 : index
      %c0_18 = arith.constant 0 : index
      %32 = vector.load %arg6[%c0_17, %c0_18] : memref<16x128xf32, #tpu.memory_space<vmem>>, vector<16x128xf32>
      tpu.vector_store %arg6[%c0_17, %c0_18], %31 {strides = array<i32>} : memref<16x128xf32, #tpu.memory_space<vmem>>, vector<16x128xf32>,
      %cst_19 = arith.constant 0.000000e+00 : f32
      %33 = vector.broadcast %cst_19 : f32 to vector<16x128xf32>
      %c0_20 = arith.constant 0 : index
      %c0_21 = arith.constant 0 : index
      %34 = vector.load %arg7[%c0_20, %c0_21] : memref<16x128xf32, #tpu.memory_space<vmem>>, vector<16x128xf32>
      tpu.vector_store %arg7[%c0_20, %c0_21], %33 {strides = array<i32>} : memref<16x128xf32, #tpu.memory_space<vmem>>, vector<16x128xf32>,
    } else {
    }
    %c0_6 = arith.constant 0 : index
    %c0_7 = arith.constant 0 : index
    %8 = vector.load %arg6[%c0_6, %c0_7] : memref<16x128xf32, #tpu.memory_space<vmem>>, vector<16x128xf32>
    %c0_8 = arith.constant 0 : index
    %c0_9 = arith.constant 0 : index
    %9 = vector.load %arg7[%c0_8, %c0_9] : memref<16x128xf32, #tpu.memory_space<vmem>>, vector<16x128xf32>
    %10 = vector.extract_strided_slice %2 {offsets = [0, 0], sizes = [16, 128], strides = [1, 1]} : vector<16x512xf32> to vector<16x128xf32>
    %11 = arith.addf %8, %10 : vector<16x128xf32>
    %12 = arith.mulf %10, %10 : vector<16x128xf32>
    %13 = arith.addf %9, %12 : vector<16x128xf32>
    %14 = vector.extract_strided_slice %2 {offsets = [0, 128], sizes = [16, 128], strides = [1, 1]} : vector<16x512xf32> to vector<16x128xf32>
    %15 = arith.addf %11, %14 : vector<16x128xf32>
    %16 = arith.mulf %14, %14 : vector<16x128xf32>
    %17 = arith.addf %13, %16 : vector<16x128xf32>
    %18 = vector.extract_strided_slice %2 {offsets = [0, 256], sizes = [16, 128], strides = [1, 1]} : vector<16x512xf32> to vector<16x128xf32>
    %19 = arith.addf %15, %18 : vector<16x128xf32>
    %20 = arith.mulf %18, %18 : vector<16x128xf32>
    %21 = arith.addf %17, %20 : vector<16x128xf32>
    %22 = vector.extract_strided_slice %2 {offsets = [0, 384], sizes = [16, 128], strides = [1, 1]} : vector<16x512xf32> to vector<16x128xf32>
    %23 = arith.addf %19, %22 : vector<16x128xf32>
    %24 = arith.mulf %22, %22 : vector<16x128xf32>
    %25 = arith.addf %21, %24 : vector<16x128xf32>
    %c0_10 = arith.constant 0 : index
    %c0_11 = arith.constant 0 : index
    %26 = vector.load %arg6[%c0_10, %c0_11] : memref<16x128xf32, #tpu.memory_space<vmem>>, vector<16x128xf32>
    tpu.vector_store %arg6[%c0_10, %c0_11], %23 {strides = array<i32>} : memref<16x128xf32, #tpu.memory_space<vmem>>, vector<16x128xf32>,
    %c0_12 = arith.constant 0 : index
    %c0_13 = arith.constant 0 : index
    %27 = vector.load %arg7[%c0_12, %c0_13] : memref<16x128xf32, #tpu.memory_space<vmem>>, vector<16x128xf32>
    tpu.vector_store %arg7[%c0_12, %c0_13], %25 {strides = array<i32>} : memref<16x128xf32, #tpu.memory_space<vmem>>, vector<16x128xf32>,
    %c0_i32_14 = arith.constant 0 : i32
    %28 = arith.cmpi eq, %arg0, %c0_i32_14 : i32
    %29 = arith.extui %28 : i1 to i32
    %c0_i32_15 = arith.constant 0 : i32
    %30 = arith.cmpi ne, %29, %c0_i32_15 : i32
    scf.if %30 {
      %c0_16 = arith.constant 0 : index
      %c0_17 = arith.constant 0 : index
      %31 = vector.load %arg6[%c0_16, %c0_17] : memref<16x128xf32, #tpu.memory_space<vmem>>, vector<16x128xf32>
      %c0_18 = arith.constant 0 : index
      %c0_19 = arith.constant 0 : index
      %32 = vector.load %arg4[%c0_18, %c0_19] : memref<16x128xf32, #tpu.memory_space<vmem>>, vector<16x128xf32>
      tpu.vector_store %arg4[%c0_18, %c0_19], %31 {strides = array<i32>} : memref<16x128xf32, #tpu.memory_space<vmem>>, vector<16x128xf32>,
      %c0_20 = arith.constant 0 : index
      %c0_21 = arith.constant 0 : index
      %33 = vector.load %arg7[%c0_20, %c0_21] : memref<16x128xf32, #tpu.memory_space<vmem>>, vector<16x128xf32>
      %c0_22 = arith.constant 0 : index
      %c0_23 = arith.constant 0 : index
      %34 = vector.load %arg5[%c0_22, %c0_23] : memref<16x128xf32, #tpu.memory_space<vmem>>, vector<16x128xf32>
      tpu.vector_store %arg5[%c0_22, %c0_23], %33 {strides = array<i32>} : memref<16x128xf32, #tpu.memory_space<vmem>>, vector<16x128xf32>,
    } else {
    }
    return
  }
  func.func @transform_0(%arg0: i32) -> (i32, i32) {
    %c0_i32 = arith.constant 0 : i32
    %c0_i32_0 = arith.constant 0 : i32
    %c0_i32_1 = arith.constant 0 : i32
    return %c0_i32, %c0_i32_0 : i32, i32
  }
  func.func @transform_1(%arg0: i32) -> (i32, i32) {
    %c0_i32 = arith.constant 0 : i32
    %c0_i32_0 = arith.constant 0 : i32
    return %c0_i32, %arg0 : i32, i32
  }
  func.func @transform_2(%arg0: i32) -> (i32, i32) {
    %c0_i32 = arith.constant 0 : i32
    %c0_i32_0 = arith.constant 0 : i32
    return %c0_i32, %arg0 : i32, i32
  }
  func.func @transform_3(%arg0: i32) -> (i32, i32) {
    %c0_i32 = arith.constant 0 : i32
    %c0_i32_0 = arith.constant 0 : i32
    %c0_i32_1 = arith.constant 0 : i32
    return %c0_i32, %c0_i32_0 : i32, i32
  }
  func.func @transform_4(%arg0: i32) -> (i32, i32) {
    %c0_i32 = arith.constant 0 : i32
    %c0_i32_0 = arith.constant 0 : i32
    %c0_i32_1 = arith.constant 0 : i32
    return %c0_i32, %c0_i32_0 : i32, i32
  }
}

module attributes {stable_mosaic.version = 11 : i64} {
  func.func @_bn_res_relu_kernel(%arg0: i32, %arg1: memref<16x512xbf16, #tpu.memory_space<vmem>>, %arg2: memref<16x128xf32, #tpu.memory_space<vmem>>, %arg3: memref<16x128xf32, #tpu.memory_space<vmem>>, %arg4: memref<16x512xbf16, #tpu.memory_space<vmem>>, %arg5: memref<16x128xf32, #tpu.memory_space<vmem>>, %arg6: memref<16x128xf32, #tpu.memory_space<vmem>>, %arg7: memref<16x512xbf16, #tpu.memory_space<vmem>>) attributes {dimension_semantics = [#tpu.dimension_semantics<arbitrary>], iteration_bounds = array<i64: 1>, scalar_prefetch = 0 : i64, scratch_operands = 0 : i64, tpu.core_type = #tpu.core_type<tc>, window_params = [{transform_indices = @transform_0, window_bounds = array<i64: 16, 512>}, {pipeline_mode = #tpu.pipeline_mode<synchronous>, transform_indices = @transform_1, window_bounds = array<i64: 16, 128>}, {pipeline_mode = #tpu.pipeline_mode<synchronous>, transform_indices = @transform_2, window_bounds = array<i64: 16, 128>}, {transform_indices = @transform_3, window_bounds = array<i64: 16, 512>}, {pipeline_mode = #tpu.pipeline_mode<synchronous>, transform_indices = @transform_4, window_bounds = array<i64: 16, 128>}, {pipeline_mode = #tpu.pipeline_mode<synchronous>, transform_indices = @transform_5, window_bounds = array<i64: 16, 128>}, {transform_indices = @transform_6, window_bounds = array<i64: 16, 512>}]} {
    %c0 = arith.constant 0 : index
    %c0_0 = arith.constant 0 : index
    %0 = vector.load %arg2[%c0, %c0_0] : memref<16x128xf32, #tpu.memory_space<vmem>>, vector<16x128xf32>
    %c0_1 = arith.constant 0 : index
    %c0_2 = arith.constant 0 : index
    %1 = vector.load %arg3[%c0_1, %c0_2] : memref<16x128xf32, #tpu.memory_space<vmem>>, vector<16x128xf32>
    %c0_3 = arith.constant 0 : index
    %c0_4 = arith.constant 0 : index
    %2 = vector.load %arg5[%c0_3, %c0_4] : memref<16x128xf32, #tpu.memory_space<vmem>>, vector<16x128xf32>
    %c0_5 = arith.constant 0 : index
    %c0_6 = arith.constant 0 : index
    %3 = vector.load %arg6[%c0_5, %c0_6] : memref<16x128xf32, #tpu.memory_space<vmem>>, vector<16x128xf32>
    %c0_7 = arith.constant 0 : index
    %c0_8 = arith.constant 0 : index
    %4 = vector.load %arg1[%c0_7, %c0_8] : memref<16x512xbf16, #tpu.memory_space<vmem>>, vector<16x128xbf16>
    %5 = arith.extf %4 : vector<16x128xbf16> to vector<16x128xf32>
    %6 = arith.mulf %5, %0 : vector<16x128xf32>
    %7 = arith.addf %6, %1 : vector<16x128xf32>
    %c0_9 = arith.constant 0 : index
    %c0_10 = arith.constant 0 : index
    %8 = vector.load %arg4[%c0_9, %c0_10] : memref<16x512xbf16, #tpu.memory_space<vmem>>, vector<16x128xbf16>
    %9 = arith.extf %8 : vector<16x128xbf16> to vector<16x128xf32>
    %10 = arith.mulf %9, %2 : vector<16x128xf32>
    %11 = arith.addf %10, %3 : vector<16x128xf32>
    %12 = arith.addf %7, %11 : vector<16x128xf32>
    %cst = arith.constant 0.000000e+00 : f32
    %13 = vector.broadcast %cst : f32 to vector<16x128xf32>
    %14 = arith.maximumf %12, %13 : vector<16x128xf32>
    %15 = arith.truncf %14 : vector<16x128xf32> to vector<16x128xbf16>
    %c0_11 = arith.constant 0 : index
    %c0_12 = arith.constant 0 : index
    %16 = vector.load %arg7[%c0_11, %c0_12] : memref<16x512xbf16, #tpu.memory_space<vmem>>, vector<16x128xbf16>
    tpu.vector_store %arg7[%c0_11, %c0_12], %15 {strides = array<i32>} : memref<16x512xbf16, #tpu.memory_space<vmem>>, vector<16x128xbf16>,
    %c0_13 = arith.constant 0 : index
    %c128 = arith.constant 128 : index
    %17 = vector.load %arg1[%c0_13, %c128] : memref<16x512xbf16, #tpu.memory_space<vmem>>, vector<16x128xbf16>
    %18 = arith.extf %17 : vector<16x128xbf16> to vector<16x128xf32>
    %19 = arith.mulf %18, %0 : vector<16x128xf32>
    %20 = arith.addf %19, %1 : vector<16x128xf32>
    %c0_14 = arith.constant 0 : index
    %c128_15 = arith.constant 128 : index
    %21 = vector.load %arg4[%c0_14, %c128_15] : memref<16x512xbf16, #tpu.memory_space<vmem>>, vector<16x128xbf16>
    %22 = arith.extf %21 : vector<16x128xbf16> to vector<16x128xf32>
    %23 = arith.mulf %22, %2 : vector<16x128xf32>
    %24 = arith.addf %23, %3 : vector<16x128xf32>
    %25 = arith.addf %20, %24 : vector<16x128xf32>
    %cst_16 = arith.constant 0.000000e+00 : f32
    %26 = vector.broadcast %cst_16 : f32 to vector<16x128xf32>
    %27 = arith.maximumf %25, %26 : vector<16x128xf32>
    %28 = arith.truncf %27 : vector<16x128xf32> to vector<16x128xbf16>
    %c0_17 = arith.constant 0 : index
    %c128_18 = arith.constant 128 : index
    %29 = vector.load %arg7[%c0_17, %c128_18] : memref<16x512xbf16, #tpu.memory_space<vmem>>, vector<16x128xbf16>
    tpu.vector_store %arg7[%c0_17, %c128_18], %28 {strides = array<i32>} : memref<16x512xbf16, #tpu.memory_space<vmem>>, vector<16x128xbf16>,
    %c0_19 = arith.constant 0 : index
    %c256 = arith.constant 256 : index
    %30 = vector.load %arg1[%c0_19, %c256] : memref<16x512xbf16, #tpu.memory_space<vmem>>, vector<16x128xbf16>
    %31 = arith.extf %30 : vector<16x128xbf16> to vector<16x128xf32>
    %32 = arith.mulf %31, %0 : vector<16x128xf32>
    %33 = arith.addf %32, %1 : vector<16x128xf32>
    %c0_20 = arith.constant 0 : index
    %c256_21 = arith.constant 256 : index
    %34 = vector.load %arg4[%c0_20, %c256_21] : memref<16x512xbf16, #tpu.memory_space<vmem>>, vector<16x128xbf16>
    %35 = arith.extf %34 : vector<16x128xbf16> to vector<16x128xf32>
    %36 = arith.mulf %35, %2 : vector<16x128xf32>
    %37 = arith.addf %36, %3 : vector<16x128xf32>
    %38 = arith.addf %33, %37 : vector<16x128xf32>
    %cst_22 = arith.constant 0.000000e+00 : f32
    %39 = vector.broadcast %cst_22 : f32 to vector<16x128xf32>
    %40 = arith.maximumf %38, %39 : vector<16x128xf32>
    %41 = arith.truncf %40 : vector<16x128xf32> to vector<16x128xbf16>
    %c0_23 = arith.constant 0 : index
    %c256_24 = arith.constant 256 : index
    %42 = vector.load %arg7[%c0_23, %c256_24] : memref<16x512xbf16, #tpu.memory_space<vmem>>, vector<16x128xbf16>
    tpu.vector_store %arg7[%c0_23, %c256_24], %41 {strides = array<i32>} : memref<16x512xbf16, #tpu.memory_space<vmem>>, vector<16x128xbf16>,
    %c0_25 = arith.constant 0 : index
    %c384 = arith.constant 384 : index
    %43 = vector.load %arg1[%c0_25, %c384] : memref<16x512xbf16, #tpu.memory_space<vmem>>, vector<16x128xbf16>
    %44 = arith.extf %43 : vector<16x128xbf16> to vector<16x128xf32>
    %45 = arith.mulf %44, %0 : vector<16x128xf32>
    %46 = arith.addf %45, %1 : vector<16x128xf32>
    %c0_26 = arith.constant 0 : index
    %c384_27 = arith.constant 384 : index
    %47 = vector.load %arg4[%c0_26, %c384_27] : memref<16x512xbf16, #tpu.memory_space<vmem>>, vector<16x128xbf16>
    %48 = arith.extf %47 : vector<16x128xbf16> to vector<16x128xf32>
    %49 = arith.mulf %48, %2 : vector<16x128xf32>
    %50 = arith.addf %49, %3 : vector<16x128xf32>
    %51 = arith.addf %46, %50 : vector<16x128xf32>
    %cst_28 = arith.constant 0.000000e+00 : f32
    %52 = vector.broadcast %cst_28 : f32 to vector<16x128xf32>
    %53 = arith.maximumf %51, %52 : vector<16x128xf32>
    %54 = arith.truncf %53 : vector<16x128xf32> to vector<16x128xbf16>
    %c0_29 = arith.constant 0 : index
    %c384_30 = arith.constant 384 : index
    %55 = vector.load %arg7[%c0_29, %c384_30] : memref<16x512xbf16, #tpu.memory_space<vmem>>, vector<16x128xbf16>
    tpu.vector_store %arg7[%c0_29, %c384_30], %54 {strides = array<i32>} : memref<16x512xbf16, #tpu.memory_space<vmem>>, vector<16x128xbf16>,
    return
  }
  func.func @transform_0(%arg0: i32) -> (i32, i32) {
    %c0_i32 = arith.constant 0 : i32
    %c0_i32_0 = arith.constant 0 : i32
    return %c0_i32, %arg0 : i32, i32
  }
  func.func @transform_1(%arg0: i32) -> (i32, i32) {
    %c0_i32 = arith.constant 0 : i32
    %c0_i32_0 = arith.constant 0 : i32
    %c0_i32_1 = arith.constant 0 : i32
    return %c0_i32, %c0_i32_0 : i32, i32
  }
  func.func @transform_2(%arg0: i32) -> (i32, i32) {
    %c0_i32 = arith.constant 0 : i32
    %c0_i32_0 = arith.constant 0 : i32
    %c0_i32_1 = arith.constant 0 : i32
    return %c0_i32, %c0_i32_0 : i32, i32
  }
  func.func @transform_3(%arg0: i32) -> (i32, i32) {
    %c0_i32 = arith.constant 0 : i32
    %c0_i32_0 = arith.constant 0 : i32
    return %c0_i32, %arg0 : i32, i32
  }
  func.func @transform_4(%arg0: i32) -> (i32, i32) {
    %c0_i32 = arith.constant 0 : i32
    %c0_i32_0 = arith.constant 0 : i32
    %c0_i32_1 = arith.constant 0 : i32
    return %c0_i32, %c0_i32_0 : i32, i32
  }
  func.func @transform_5(%arg0: i32) -> (i32, i32) {
    %c0_i32 = arith.constant 0 : i32
    %c0_i32_0 = arith.constant 0 : i32
    %c0_i32_1 = arith.constant 0 : i32
    return %c0_i32, %c0_i32_0 : i32, i32
  }
  func.func @transform_6(%arg0: i32) -> (i32, i32) {
    %c0_i32 = arith.constant 0 : i32
    %c0_i32_0 = arith.constant 0 : i32
    return %c0_i32, %arg0 : i32, i32
  }
}

</mosaic_0001>

<bundles_post_ra>
// kernel: res_layer.17
= control target key start
LH: loop header
LB: loop body
LE: loop exit
PB: predicated region body
PF: predicated region fallthrough
CT: control target
= control target key end

     0   :  { %s230_s0 = inlined_call_operand.vmem [shape: bf16[16,512], index: 0, kind: input, shape index: {}]   ;;  %s231_s1 = inlined_call_operand.vmem [shape: f32[16,128], index: 1, kind: input, shape index: {}]   ;;  %s232_s2 = inlined_call_operand.vmem [shape: f32[16,128], index: 2, kind: input, shape index: {}]   ;;  %s233_s3 = inlined_call_operand.vmem [shape: bf16[16,512], index: 3, kind: output, shape index: {0}]   ;;  %s234_s4 = inlined_call_operand.vmem [shape: f32[16,128], index: 4, kind: output, shape index: {1}]   ;;  %s235_s5 = inlined_call_operand.vmem [shape: f32[16,128], index: 5, kind: output, shape index: {2}]  }
   0x1   :  { %v25_v0 = vld [vmem:[%s231_s1] sm:$0xff]  ;;  %v26_v3 = vld [vmem:[%s231_s1 + $0x8] sm:$0xff]  ;;  %v34_v4 = vld [vmem:[%s230_s0 + $0x10] sm:$0xff]  }
   0x2   :  { %v33_v1 = vld [vmem:[%s230_s0] sm:$0xff]   ;;  %v36_v7 = vunpack.c.l.bf16 %v34_v4  ;;  %v56_v8 = vunpack.c.h.bf16 %v34_v4  ;;  %v73_v9 = vld [vmem:[%s230_s0 + $0x8] sm:$0xff]   ;;  %v74_v10 = vld [vmem:[%s230_s0 + $0x18] sm:$0xff]  }
   0x3   :  { %v35_v2 = vunpack.c.l.bf16 %v33_v1  ;;  %v55_v5 = vunpack.c.h.bf16 %v33_v1  ;;  %v27_v6 = vld [vmem:[%s232_s2] sm:$0xff]  ;;  %v28_v12 = vld [vmem:[%s232_s2 + $0x8] sm:$0xff]  ;;  %v75_v14 = vunpack.c.l.bf16 %v73_v9  ;;  %v76_v15 = vunpack.c.l.bf16 %v74_v10 }
   0x4   :  { %v38_v16 = vmul.f32 %v36_v7, %v26_v3  ;;  %v58_v17 = vmul.f32 %v56_v8, %v26_v3  ;;  %v95_v18 = vunpack.c.h.bf16 %v73_v9  ;;  %v96_v19 = vunpack.c.h.bf16 %v74_v10 }
   0x5   :  { %v37_v11 = vmul.f32 %v35_v2, %v25_v0  ;;  %v57_v13 = vmul.f32 %v55_v5, %v25_v0  ;;  %v77_v22 = vmul.f32 %v75_v14, %v25_v0  ;;  %v78_v23 = vmul.f32 %v76_v15, %v26_v3 }
   0x6   :  { %v40_v24 = vadd.f32 %v38_v16, %v28_v12  ;;  %v60_v25 = vadd.f32 %v58_v17, %v28_v12  ;;  %v97_v26 = vmul.f32 %v95_v18, %v25_v0  ;;  %v98_v27 = vmul.f32 %v96_v19, %v26_v3 }
   0x7   :  { %v39_v20 = vadd.f32 %v37_v11, %v27_v6  ;;  %v59_v21 = vadd.f32 %v57_v13, %v27_v6  ;;  %v79_v30 = vadd.f32 %v77_v22, %v27_v6  ;;  %v80_v31 = vadd.f32 %v78_v23, %v28_v12 }
   0x8   :  { %v42_v32 = vmax.f32 %v40_v24, 0.0  ;;  %v62_v33 = vmax.f32 %v60_v25, 0.0  ;;  %v99_v34 = vadd.f32 %v97_v26, %v27_v6  ;;  %v100_v35 = vadd.f32 %v98_v27, %v28_v12 }
   0x9   :  { %v41_v28 = vmax.f32 %v39_v20, 0.0  ;;  %v61_v29 = vmax.f32 %v59_v21, 0.0  ;;  %v81_v38 = vmax.f32 %v79_v30, 0.0  ;;  %v82_v39 = vmax.f32 %v80_v31, 0.0 }
   0xa   :  { %v44_v40 = vpack.c.bf16 %v42_v32, %v42_v32  ;;  %v64_v41 = vpack.c.bf16 %v62_v33, %v62_v33  ;;  %v101_v42 = vmax.f32 %v99_v34, 0.0  ;;  %v102_v43 = vmax.f32 %v100_v35, 0.0 }
   0xb   :  { %v43_v36 = vpack.c.bf16 %v41_v28, %v41_v28  ;;  %v63_v37 = vpack.c.bf16 %v61_v29, %v61_v29  ;;  %v83_v44 = vpack.c.bf16 %v81_v38, %v81_v38  ;;  %v84_v45 = vpack.c.bf16 %v82_v39, %v82_v39 }
   0xc   :  { %v67_v46 = vadd.f32 %v61_v29, %v41_v28  ;;  %v68_v47 = vadd.f32 %v62_v33, %v42_v32  ;;  %46 = vst [vmem:[%s233_s3 + $0x10] sm:$0xf] %v44_v40  ;;  %v103_v48 = vpack.c.bf16 %v101_v42, %v101_v42  ;;  %v104_v49 = vpack.c.bf16 %v102_v43, %v102_v43 }
   0xd   :  { %45 = vst [vmem:[%s233_s3] sm:$0xf] %v43_v36  ;;  %v49_v50 = vmul.f32 %v41_v28, %v41_v28  ;;  %v69_v51 = vmul.f32 %v61_v29, %v61_v29  ;;  %v89_v54 = vmul.f32 %v81_v38, %v81_v38  ;;  %v109_v55 = vmul.f32 %v101_v42, %v101_v42 }
   0xe   :  { %65 = vst [vmem:[%s233_s3 + $0x4] sm:$0xf] %v63_v37  ;;  %v87_v52 = vadd.f32 %v81_v38, %v67_v46  ;;  %v88_v53 = vadd.f32 %v82_v39, %v68_v47  ;;  %v50_v57 = vmul.f32 %v42_v32, %v42_v32  ;;  %v70_v58 = vmul.f32 %v62_v33, %v62_v33 }
   0xf   :  { %66 = vst [vmem:[%s233_s3 + $0x14] sm:$0xf] %v64_v41  ;;  %v71_v56 = vadd.f32 %v69_v51, %v49_v50  ;;  %v90_v59 = vmul.f32 %v82_v39, %v82_v39  ;;  %v110_v0 = vmul.f32 %v102_v43, %v102_v43 }
  0x10   :  { %85 = vst [vmem:[%s233_s3 + $0x8] sm:$0xf] %v83_v44  ;;  %v107_v60 = vadd.f32 %v101_v42, %v87_v52  ;;  %v108_v61 = vadd.f32 %v102_v43, %v88_v53  ;;  %v72_v63 = vadd.f32 %v70_v58, %v50_v57 }
  0x11   :  { %86 = vst [vmem:[%s233_s3 + $0x18] sm:$0xf] %v84_v45  ;;  %v91_v62 = vadd.f32 %v89_v54, %v71_v56 }
  0x12   :  { %105 = vst [vmem:[%s233_s3 + $0xc] sm:$0xf] %v103_v48  ;;  %v92_v2 = vadd.f32 %v90_v59, %v72_v63 }
  0x13   :  { %106 = vst [vmem:[%s233_s3 + $0x1c] sm:$0xf] %v104_v49  ;;  %v111_v1 = vadd.f32 %v109_v55, %v91_v62 }
  0x14   :  { %122 = vst [vmem:[%s234_s4] sm:$0xff] %v107_v60  ;;  %v112_v3 = vadd.f32 %v110_v0, %v92_v2 }
  0x15   :  { %123 = vst [vmem:[%s234_s4 + $0x8] sm:$0xff] %v108_v61 }
  0x16   :  { %126 = vst [vmem:[%s235_s5] sm:$0xff] %v111_v1 }
  0x17   :  { %127 = vst [vmem:[%s235_s5 + $0x8] sm:$0xff] %v112_v3 }

// kernel: res_layer.16
= control target key start
LH: loop header
LB: loop body
LE: loop exit
PB: predicated region body
PF: predicated region fallthrough
CT: control target
= control target key end

     0   :  { %s750_s1 = inlined_call_operand.vmem [shape: bf16[128,512], index: 1, kind: input, shape index: {}]   ;;  %s751_s0 = inlined_call_operand.vmem [shape: bf16[16,128], index: 0, kind: input, shape index: {}]   ;;  %s752_s2 = inlined_call_operand.vmem [shape: bf16[16,512], index: 2, kind: output, shape index: {0}]   ;;  %s753_s3 = inlined_call_operand.vmem [shape: f32[16,128], index: 3, kind: output, shape index: {1}]   ;;  %s754_s4 = inlined_call_operand.vmem [shape: f32[16,128], index: 4, kind: output, shape index: {2}]  }
   0x1   :  { %v459_v0 = vld [vmem:[%s750_s1 + $0xe0] sm:$0xf]  ;;  %v504_v1 = vld [vmem:[%s750_s1 + $0xec] sm:$0xf0]  ;;  %v502_v2 = vld [vmem:[%s750_s1 + $0xe4] sm:$0xf] }
   0x2   :  { %v460_v3 = vor.u32 %v504_v1, %v459_v0  ;;  %v461_v4 = vld [vmem:[%s750_s1 + $0xf0] sm:$0xf0]  ;;  %v467_v5 = vld [vmem:[%s750_s1 + $0xe8] sm:$0xf]  ;;  %v505_v6 = vld [vmem:[%s750_s1 + $0xf4] sm:$0xf0] }
   0x3   :  { %v464_v7 = vor.u32 %v502_v2, %v461_v4  ;;  %v468_v8 = vor.u32 %v505_v6, %v467_v5  ;;  %v503_v9 = vld [vmem:[%s750_s1 + $0xec] sm:$0xf]  ;;  %v469_v10 = vld [vmem:[%s750_s1 + $0xf8] sm:$0xf0]  ;;  %v443_v11 = vld [vmem:[%s750_s1 + $0xc0] sm:$0xf] }
   0x4   :  { %214 = vmatpush.bf16.msra.mxu0 %v460_v3  ;;  %v472_v12 = vor.u32 %v503_v9, %v469_v10  ;;  %v500_v13 = vld [vmem:[%s750_s1 + $0xcc] sm:$0xf0]  ;;  %v498_v14 = vld [vmem:[%s750_s1 + $0xc4] sm:$0xf]  ;;  %v445_v15 = vld [vmem:[%s750_s1 + $0xd0] sm:$0xf0] }
   0x5   :  { %228 = vmatpush.bf16.msra.mxu1 %v464_v7  ;;  %242 = vmatpush.bf16.msra.mxu2 %v468_v8  ;;  %v444_v16 = vor.u32 %v500_v13, %v443_v11  ;;  %v448_v17 = vor.u32 %v498_v14, %v445_v15  ;;  %v451_v18 = vld [vmem:[%s750_s1 + $0xc8] sm:$0xf]  ;;  %v501_v19 = vld [vmem:[%s750_s1 + $0xd4] sm:$0xf0]  ;;  %v499_v20 = vld [vmem:[%s750_s1 + $0xcc] sm:$0xf] }
   0x6   :  { %256 = vmatpush.bf16.msra.mxu3 %v472_v12  ;;  %v452_v21 = vor.u32 %v501_v19, %v451_v18  ;;  %v453_v22 = vld [vmem:[%s750_s1 + $0xd8] sm:$0xf0]  ;;  %v427_v23 = vld [vmem:[%s750_s1 + $0xa0] sm:$0xf]  ;;  %v496_v24 = vld [vmem:[%s750_s1 + $0xac] sm:$0xf0] }
   0x7   :  { %v456_v25 = vor.u32 %v499_v20, %v453_v22  ;;  %v494_v26 = vld [vmem:[%s750_s1 + $0xa4] sm:$0xf]  ;;  %v429_v27 = vld [vmem:[%s750_s1 + $0xb0] sm:$0xf0]  ;;  %v435_v28 = vld [vmem:[%s750_s1 + $0xa8] sm:$0xf]  ;;  %v428_v29 = vor.u32 %v496_v24, %v427_v23 }
   0x8   :  { %215 = vmatpush.bf16.msra.mxu0 %v444_v16  ;;  %v497_v30 = vld [vmem:[%s750_s1 + $0xb4] sm:$0xf0]  ;;  %v495_v31 = vld [vmem:[%s750_s1 + $0xac] sm:$0xf]  ;;  %v437_v32 = vld [vmem:[%s750_s1 + $0xb8] sm:$0xf0]  ;;  %v432_v33 = vor.u32 %v494_v26, %v429_v27 }
   0x9   :  { %229 = vmatpush.bf16.msra.mxu1 %v448_v17  ;;  %243 = vmatpush.bf16.msra.mxu2 %v452_v21  ;;  %v436_v34 = vor.u32 %v497_v30, %v435_v28  ;;  %v411_v35 = vld [vmem:[%s750_s1 + $0x80] sm:$0xf]  ;;  %v492_v36 = vld [vmem:[%s750_s1 + $0x8c] sm:$0xf0]  ;;  %v490_v37 = vld [vmem:[%s750_s1 + $0x84] sm:$0xf]  ;;  %v440_v38 = vor.u32 %v495_v31, %v437_v32 }
   0xa   :  { %257 = vmatpush.bf16.msra.mxu3 %v456_v25  ;;  %v413_v39 = vld [vmem:[%s750_s1 + $0x90] sm:$0xf0]  ;;  %v419_v40 = vld [vmem:[%s750_s1 + $0x88] sm:$0xf]  ;;  %v493_v41 = vld [vmem:[%s750_s1 + $0x94] sm:$0xf0]  ;;  %v412_v44 = vor.u32 %v492_v36, %v411_v35 }
   0xb   :  { %v491_v42 = vld [vmem:[%s750_s1 + $0x8c] sm:$0xf]  ;;  %v421_v43 = vld [vmem:[%s750_s1 + $0x98] sm:$0xf0]  ;;  %v416_v45 = vor.u32 %v490_v37, %v413_v39  ;;  %v420_v46 = vor.u32 %v493_v41, %v419_v40  ;;  %v395_v47 = vld [vmem:[%s750_s1 + $0x60] sm:$0xf] }
   0xc   :  { %216 = vmatpush.bf16.msra.mxu0 %v428_v29  ;;  %v488_v48 = vld [vmem:[%s750_s1 + $0x6c] sm:$0xf0]  ;;  %v486_v49 = vld [vmem:[%s750_s1 + $0x64] sm:$0xf]  ;;  %v424_v50 = vor.u32 %v491_v42, %v421_v43  ;;  %v397_v51 = vld [vmem:[%s750_s1 + $0x70] sm:$0xf0] }
   0xd   :  { %230 = vmatpush.bf16.msra.mxu1 %v432_v33  ;;  %244 = vmatpush.bf16.msra.mxu2 %v436_v34  ;;  %v403_v52 = vld [vmem:[%s750_s1 + $0x68] sm:$0xf]  ;;  %v489_v53 = vld [vmem:[%s750_s1 + $0x74] sm:$0xf0]  ;;  %v487_v54 = vld [vmem:[%s750_s1 + $0x6c] sm:$0xf]  ;;  %v396_v56 = vor.u32 %v488_v48, %v395_v47  ;;  %v400_v57 = vor.u32 %v486_v49, %v397_v51 }
   0xe   :  { %258 = vmatpush.bf16.msra.mxu3 %v440_v38  ;;  %v405_v55 = vld [vmem:[%s750_s1 + $0x78] sm:$0xf0]  ;;  %v404_v58 = vor.u32 %v489_v53, %v403_v52  ;;  %v379_v59 = vld [vmem:[%s750_s1 + $0x40] sm:$0xf]  ;;  %v484_v60 = vld [vmem:[%s750_s1 + $0x4c] sm:$0xf0] }
   0xf   :  { %v482_v61 = vld [vmem:[%s750_s1 + $0x44] sm:$0xf]  ;;  %v408_v62 = vor.u32 %v487_v54, %v405_v55  ;;  %v381_v63 = vld [vmem:[%s750_s1 + $0x50] sm:$0xf0]  ;;  %v387_v0 = vld [vmem:[%s750_s1 + $0x48] sm:$0xf]  ;;  %v380_v4 = vor.u32 %v484_v60, %v379_v59 }
  0x10   :  { %217 = vmatpush.bf16.msra.mxu0 %v412_v44  ;;  %v485_v1 = vld [vmem:[%s750_s1 + $0x54] sm:$0xf0]  ;;  %v483_v2 = vld [vmem:[%s750_s1 + $0x4c] sm:$0xf]  ;;  %v389_v3 = vld [vmem:[%s750_s1 + $0x58] sm:$0xf0]  ;;  %v384_v5 = vor.u32 %v482_v61, %v381_v63 }
  0x11   :  { %231 = vmatpush.bf16.msra.mxu1 %v416_v45  ;;  %245 = vmatpush.bf16.msra.mxu2 %v420_v46  ;;  %v388_v6 = vor.u32 %v485_v1, %v387_v0  ;;  %v363_v7 = vld [vmem:[%s750_s1 + $0x20] sm:$0xf]  ;;  %v480_v8 = vld [vmem:[%s750_s1 + $0x2c] sm:$0xf0]  ;;  %v478_v9 = vld [vmem:[%s750_s1 + $0x24] sm:$0xf]  ;;  %v392_v10 = vor.u32 %v483_v2, %v389_v3 }
  0x12   :  { %259 = vmatpush.bf16.msra.mxu3 %v424_v50  ;;  %v365_v11 = vld [vmem:[%s750_s1 + $0x30] sm:$0xf0]  ;;  %v371_v12 = vld [vmem:[%s750_s1 + $0x28] sm:$0xf]  ;;  %v481_v13 = vld [vmem:[%s750_s1 + $0x34] sm:$0xf0]  ;;  %v364_v16 = vor.u32 %v480_v8, %v363_v7 }
  0x13   :  { %v479_v14 = vld [vmem:[%s750_s1 + $0x2c] sm:$0xf]  ;;  %v373_v15 = vld [vmem:[%s750_s1 + $0x38] sm:$0xf0]  ;;  %v368_v17 = vor.u32 %v478_v9, %v365_v11  ;;  %v372_v18 = vor.u32 %v481_v13, %v371_v12  ;;  %v347_v19 = vld [vmem:[%s750_s1] sm:$0xf] }
  0x14   :  { %218 = vmatpush.bf16.msra.mxu0 %v396_v56  ;;  %v476_v20 = vld [vmem:[%s750_s1 + $0xc] sm:$0xf0]  ;;  %v474_v21 = vld [vmem:[%s750_s1 + $0x4] sm:$0xf]  ;;  %v376_v22 = vor.u32 %v479_v14, %v373_v15  ;;  %v349_v23 = vld [vmem:[%s750_s1 + $0x10] sm:$0xf0] }
  0x15   :  { %232 = vmatpush.bf16.msra.mxu1 %v400_v57  ;;  %246 = vmatpush.bf16.msra.mxu2 %v404_v58  ;;  %v355_v24 = vld [vmem:[%s750_s1 + $0x8] sm:$0xf]  ;;  %v477_v25 = vld [vmem:[%s750_s1 + $0x14] sm:$0xf0]  ;;  %v475_v26 = vld [vmem:[%s750_s1 + $0xc] sm:$0xf]  ;;  %v348_v28 = vor.u32 %v476_v20, %v347_v19  ;;  %v352_v29 = vor.u32 %v474_v21, %v349_v23 }
  0x16   :  { %260 = vmatpush.bf16.msra.mxu3 %v408_v62  ;;  %v357_v27 = vld [vmem:[%s750_s1 + $0x18] sm:$0xf0]  ;;  %v356_v30 = vor.u32 %v477_v25, %v355_v24  ;;  %v473_v32 = vld [vmem:[%s751_s0] sm:$0xff] }
  0x17   :  { %v360_v31 = vor.u32 %v475_v26, %v357_v27 }
  0x18   :  { %219 = vmatpush.bf16.msra.mxu0 %v380_v4 }
  0x19   :  { %233 = vmatpush.bf16.msra.mxu1 %v384_v5  ;;  %247 = vmatpush.bf16.msra.mxu2 %v388_v6 }
  0x1a   :  { %261 = vmatpush.bf16.msra.mxu3 %v392_v10 }
  0x1c   :  { %220 = vmatpush.bf16.msra.mxu0 %v364_v16 }
  0x1d   :  { %234 = vmatpush.bf16.msra.mxu1 %v368_v17  ;;  %248 = vmatpush.bf16.msra.mxu2 %v372_v18 }
  0x1e   :  { %262 = vmatpush.bf16.msra.mxu3 %v376_v22 }
  0x20   :  { %221 = vmatpush.bf16.msra.mxu0 %v348_v28 }
  0x21   :  { %235 = vmatpush.bf16.msra.mxu1 %v352_v29  ;;  %249 = vmatpush.bf16.msra.mxu2 %v356_v30 }
  0x22   :  { %263 = vmatpush.bf16.msra.mxu3 %v360_v31 }
  0x23   :  { %222 = vmatmul.bf16.vlgmr.msra.gmra.mxu0 %v473_v32 }
  0x24   :  { %236 = vmatmul.bf16.vlgmr.msra.gmra.mxu1 %v473_v32  ;;  %250 = vmatmul.bf16.vlgmr.msra.gmra.mxu2 %v473_v32 }
  0x25   :  { %264 = vmatmul.bf16.vlgmr.msra.gmra.mxu3 %v473_v32 }
  0xa0   :  { %v223_v33 = vpop.f32.mrf.mxu0 }
  0xa1   :  { %v237_v34 = vpop.f32.mrf.mxu1  ;;  %v292_v35 = vmul.f32 %v223_v33, %v223_v33 }
  0xa2   :  { %v270_v36 = vpack.c.bf16 %v237_v34, %v223_v33  ;;  %v298_v37 = vmul.f32 %v237_v34, %v237_v34  ;;  %v296_v38 = vadd.f32 %v237_v34, %v223_v33 }
  0xa4   :  { %274 = vst [vmem:[%s752_s2] sm:$0xff] %v270_v36  ;;  %v300_v39 = vadd.f32 %v298_v37, %v292_v35 }
  0xa7   :  { %v251_v40 = vpop.f32.mrf.mxu2 }
  0xa8   :  { %v302_v41 = vadd.f32 %v296_v38, %v251_v40  ;;  %v304_v42 = vmul.f32 %v251_v40, %v251_v40  ;;  %v265_v43 = vpop.f32.mrf.mxu3  ;;  %v225_v44 = vpop.f32.mrf.mxu0 }
  0xa9   :  { %v271_v45 = vpack.c.bf16 %v265_v43, %v251_v40  ;;  %v310_v46 = vmul.f32 %v265_v43, %v265_v43  ;;  %v239_v47 = vpop.f32.mrf.mxu1  ;;  %v293_v52 = vmul.f32 %v225_v44, %v225_v44 }
  0xaa   :  { %v306_v48 = vadd.f32 %v304_v42, %v300_v39  ;;  %v308_v49 = vadd.f32 %v302_v41, %v265_v43  ;;  %v272_v50 = vpack.c.bf16 %v239_v47, %v225_v44  ;;  %v299_v53 = vmul.f32 %v239_v47, %v239_v47 }
  0xab   :  { %275 = vst [vmem:[%s752_s2 + $0x8] sm:$0xff] %v271_v45  ;;  %v297_v54 = vadd.f32 %v239_v47, %v225_v44 }
  0xac   :  { %v312_v51 = vadd.f32 %v310_v46, %v306_v48  ;;  %276 = vst [vmem:[%s752_s2 + $0x10] sm:$0xff] %v272_v50  ;;  %v301_v56 = vadd.f32 %v299_v53, %v293_v52 }
  0xad   :  { %323 = vst [vmem:[%s753_s3] sm:$0xff] %v308_v49 }
  0xae   :  { %327 = vst [vmem:[%s754_s4] sm:$0xff] %v312_v51 }
  0xaf   :  { %v253_v55 = vpop.f32.mrf.mxu2 }
  0xb0   :  { %v303_v57 = vadd.f32 %v297_v54, %v253_v55  ;;  %v305_v58 = vmul.f32 %v253_v55, %v253_v55  ;;  %v267_v59 = vpop.f32.mrf.mxu3 }
  0xb1   :  { %v273_v60 = vpack.c.bf16 %v267_v59, %v253_v55  ;;  %v311_v63 = vmul.f32 %v267_v59, %v267_v59 }
  0xb2   :  { %v307_v61 = vadd.f32 %v305_v58, %v301_v56  ;;  %v309_v62 = vadd.f32 %v303_v57, %v267_v59 }
  0xb3   :  { %277 = vst [vmem:[%s752_s2 + $0x18] sm:$0xff] %v273_v60 }
  0xb4   :  { %v313_v0 = vadd.f32 %v311_v63, %v307_v61  ;;  %324 = vst [vmem:[%s753_s3 + $0x8] sm:$0xff] %v309_v62 }
  0xb6   :  { %328 = vst [vmem:[%s754_s4 + $0x8] sm:$0xff] %v313_v0 }

// kernel: res_layer.18
= control target key start
LH: loop header
LB: loop body
LE: loop exit
PB: predicated region body
PF: predicated region fallthrough
CT: control target
= control target key end

     0   :  { %s286_s0 = inlined_call_operand.vmem [shape: bf16[16,512], index: 0, kind: input, shape index: {}]   ;;  %s287_s1 = inlined_call_operand.vmem [shape: f32[16,128], index: 1, kind: input, shape index: {}]   ;;  %s288_s2 = inlined_call_operand.vmem [shape: f32[16,128], index: 2, kind: input, shape index: {}]   ;;  %s289_s3 = inlined_call_operand.vmem [shape: bf16[16,512], index: 3, kind: input, shape index: {}]   ;;  %s290_s4 = inlined_call_operand.vmem [shape: f32[16,128], index: 4, kind: input, shape index: {}]   ;;  %s291_s5 = inlined_call_operand.vmem [shape: f32[16,128], index: 5, kind: input, shape index: {}]   ;;  %s292_s6 = inlined_call_operand.vmem [shape: bf16[16,512], index: 6, kind: output, shape index: {}]  }
   0x1   :  { %v169_v0 = vld [vmem:[%s287_s1] sm:$0xff]  ;;  %v195_v8 = vld [vmem:[%s287_s1 + $0x8] sm:$0xff]  ;;  %v32_v12 = vld [vmem:[%s286_s0 + $0x10] sm:$0xff]  }
   0x2   :  { %v174_v1 = vld [vmem:[%s290_s4] sm:$0xff]  ;;  %v200_v11 = vld [vmem:[%s290_s4 + $0x8] sm:$0xff]  ;;  %v40_v13 = vld [vmem:[%s289_s3 + $0x10] sm:$0xff]   ;;  %v34_v16 = vunpack.c.l.bf16 %v32_v12  ;;  %v58_v22 = vunpack.c.h.bf16 %v32_v12 }
   0x3   :  { %v31_v2 = vld [vmem:[%s286_s0] sm:$0xff]   ;;  %v42_v17 = vunpack.c.l.bf16 %v40_v13  ;;  %v213_v18 = vld [vmem:[%s288_s2 + $0x8] sm:$0xff]  ;;  %v66_v23 = vunpack.c.h.bf16 %v40_v13  ;;  %v80_v34 = vld [vmem:[%s286_s0 + $0x18] sm:$0xff]  }
   0x4   :  { %v39_v3 = vld [vmem:[%s289_s3] sm:$0xff]   ;;  %v33_v6 = vunpack.c.l.bf16 %v31_v2  ;;  %v57_v9 = vunpack.c.h.bf16 %v31_v2  ;;  %v218_v19 = vld [vmem:[%s291_s5 + $0x8] sm:$0xff]  ;;  %v36_v27 = vmul.f32 %v34_v16, %v195_v8  ;;  %v60_v32 = vmul.f32 %v58_v22, %v195_v8  ;;  %v88_v39 = vld [vmem:[%s289_s3 + $0x18] sm:$0xff]  }
   0x5   :  { %v185_v4 = vld [vmem:[%s288_s2] sm:$0xff]  ;;  %v41_v7 = vunpack.c.l.bf16 %v39_v3  ;;  %v65_v10 = vunpack.c.h.bf16 %v39_v3  ;;  %v79_v24 = vld [vmem:[%s286_s0 + $0x8] sm:$0xff]   ;;  %v44_v28 = vmul.f32 %v42_v17, %v200_v11  ;;  %v68_v33 = vmul.f32 %v66_v23, %v200_v11 }
   0x6   :  { %v190_v5 = vld [vmem:[%s291_s5] sm:$0xff]  ;;  %v35_v14 = vmul.f32 %v33_v6, %v169_v0  ;;  %v59_v20 = vmul.f32 %v57_v9, %v169_v0  ;;  %v87_v29 = vld [vmem:[%s289_s3 + $0x8] sm:$0xff]   ;;  %v38_v36 = vadd.f32 %v36_v27, %v213_v18  ;;  %v81_v38 = vunpack.c.l.bf16 %v79_v24 }
   0x7   :  { %v43_v15 = vmul.f32 %v41_v7, %v174_v1  ;;  %v67_v21 = vmul.f32 %v65_v10, %v174_v1  ;;  %v46_v37 = vadd.f32 %v44_v28, %v218_v19  ;;  %v62_v41 = vadd.f32 %v60_v32, %v213_v18 }
   0x8   :  { %v37_v25 = vadd.f32 %v35_v14, %v185_v4  ;;  %v61_v30 = vadd.f32 %v59_v20, %v185_v4  ;;  %v70_v42 = vadd.f32 %v68_v33, %v218_v19  ;;  %v89_v43 = vunpack.c.l.bf16 %v87_v29 }
   0x9   :  { %v45_v26 = vadd.f32 %v43_v15, %v190_v5  ;;  %v69_v31 = vadd.f32 %v67_v21, %v190_v5  ;;  %v48_v45 = vadd.f32 %v46_v37, %v38_v36  ;;  %v83_v46 = vmul.f32 %v81_v38, %v169_v0 }
   0xa   :  { %v82_v47 = vunpack.c.l.bf16 %v80_v34  ;;  %v72_v49 = vadd.f32 %v70_v42, %v62_v41  ;;  %v91_v50 = vmul.f32 %v89_v43, %v174_v1  ;;  %v90_v51 = vunpack.c.l.bf16 %v88_v39 }
   0xb   :  { %v47_v35 = vadd.f32 %v45_v26, %v37_v25  ;;  %v71_v40 = vadd.f32 %v69_v31, %v61_v30  ;;  %v50_v53 = vmax.f32 %v48_v45, 0.0  ;;  %v85_v54 = vadd.f32 %v83_v46, %v185_v4 }
   0xc   :  { %v84_v55 = vmul.f32 %v82_v47, %v195_v8  ;;  %v74_v57 = vmax.f32 %v72_v49, 0.0  ;;  %v93_v58 = vadd.f32 %v91_v50, %v190_v5  ;;  %v92_v59 = vmul.f32 %v90_v51, %v200_v11 }
   0xd   :  { %v49_v44 = vmax.f32 %v47_v35, 0.0  ;;  %v73_v48 = vmax.f32 %v71_v40, 0.0  ;;  %v52_v60 = vpack.c.bf16 %v50_v53, %v50_v53  ;;  %v105_v62 = vunpack.c.h.bf16 %v79_v24 }
   0xe   :  { %v86_v61 = vadd.f32 %v84_v55, %v213_v18  ;;  %v113_v63 = vunpack.c.h.bf16 %v87_v29  ;;  %v76_v2 = vpack.c.bf16 %v74_v57, %v74_v57  ;;  %v95_v3 = vadd.f32 %v93_v58, %v85_v54 }
   0xf   :  { %v51_v52 = vpack.c.bf16 %v49_v44, %v49_v44  ;;  %v75_v56 = vpack.c.bf16 %v73_v48, %v73_v48  ;;  %v94_v6 = vadd.f32 %v92_v59, %v218_v19  ;;  %v106_v7 = vunpack.c.h.bf16 %v80_v34  ;;  %54 = vst [vmem:[%s292_s6 + $0x10] sm:$0xf] %v52_v60 }
  0x10   :  { %v107_v9 = vmul.f32 %v105_v62, %v169_v0  ;;  %v115_v10 = vmul.f32 %v113_v63, %v174_v1  ;;  %v114_v12 = vunpack.c.h.bf16 %v88_v39  ;;  %78 = vst [vmem:[%s292_s6 + $0x14] sm:$0xf] %v76_v2  ;;  %v97_v13 = vmax.f32 %v95_v3, 0.0 }
  0x11   :  { %53 = vst [vmem:[%s292_s6] sm:$0xf] %v51_v52  ;;  %v96_v14 = vadd.f32 %v94_v6, %v86_v61  ;;  %v108_v15 = vmul.f32 %v106_v7, %v195_v8 }
  0x12   :  { %77 = vst [vmem:[%s292_s6 + $0x4] sm:$0xf] %v75_v56  ;;  %v109_v16 = vadd.f32 %v107_v9, %v185_v4  ;;  %v117_v17 = vadd.f32 %v115_v10, %v190_v5  ;;  %v116_v20 = vmul.f32 %v114_v12, %v200_v11  ;;  %v99_v21 = vpack.c.bf16 %v97_v13, %v97_v13 }
  0x13   :  { %v98_v22 = vmax.f32 %v96_v14, 0.0  ;;  %v110_v0 = vadd.f32 %v108_v15, %v213_v18 }
  0x14   :  { %v119_v1 = vadd.f32 %v117_v17, %v109_v16  ;;  %v118_v23 = vadd.f32 %v116_v20, %v218_v19  ;;  %101 = vst [vmem:[%s292_s6 + $0x8] sm:$0xf] %v99_v21 }
  0x15   :  { %v100_v24 = vpack.c.bf16 %v98_v22, %v98_v22 }
  0x16   :  { %v121_v25 = vmax.f32 %v119_v1, 0.0  ;;  %v120_v8 = vadd.f32 %v118_v23, %v110_v0 }
  0x17   :  { %102 = vst [vmem:[%s292_s6 + $0x18] sm:$0xf] %v100_v24 }
  0x18   :  { %v123_v4 = vpack.c.bf16 %v121_v25, %v121_v25  ;;  %v122_v5 = vmax.f32 %v120_v8, 0.0 }
  0x1a   :  { %125 = vst [vmem:[%s292_s6 + $0xc] sm:$0xf] %v123_v4  ;;  %v124_v11 = vpack.c.bf16 %v122_v5, %v122_v5 }
  0x1c   :  { %126 = vst [vmem:[%s292_s6 + $0x1c] sm:$0xf] %v124_v11 }

// kernel: res_layer.14
= control target key start
LH: loop header
LB: loop body
LE: loop exit
PB: predicated region body
PF: predicated region fallthrough
CT: control target
= control target key end

     0   :  { %s1380_s1 = inlined_call_operand.vmem [shape: bf16[256,512], index: 1, kind: input, shape index: {}]   ;;  %s1381_s0 = inlined_call_operand.vmem [shape: bf16[16,256], index: 0, kind: input, shape index: {}]   ;;  %s1382_s2 = inlined_call_operand.vmem [shape: bf16[16,512], index: 2, kind: output, shape index: {0}]   ;;  %s1383_s3 = inlined_call_operand.vmem [shape: f32[16,128], index: 3, kind: output, shape index: {1}]   ;;  %s1384_s4 = inlined_call_operand.vmem [shape: f32[16,128], index: 4, kind: output, shape index: {2}]  }
   0x1   :  { %v715_v0 = vld [vmem:[%s1380_s1 + $0xe0] sm:$0xf]  ;;  %v889_v1 = vld [vmem:[%s1380_s1 + $0xec] sm:$0xf0]  ;;  %v887_v5 = vld [vmem:[%s1380_s1 + $0xe4] sm:$0xf] }
   0x2   :  { %v843_v2 = vld [vmem:[%s1380_s1 + $0x1e0] sm:$0xf]  ;;  %v716_v3 = vor.u32 %v889_v1, %v715_v0  ;;  %v921_v4 = vld [vmem:[%s1380_s1 + $0x1ec] sm:$0xf0]  ;;  %v717_v6 = vld [vmem:[%s1380_s1 + $0xf0] sm:$0xf0] }
   0x3   :  { %v844_v7 = vor.u32 %v921_v4, %v843_v2  ;;  %v720_v8 = vor.u32 %v887_v5, %v717_v6  ;;  %v919_v9 = vld [vmem:[%s1380_s1 + $0x1e4] sm:$0xf]  ;;  %v845_v10 = vld [vmem:[%s1380_s1 + $0x1f0] sm:$0xf0]  ;;  %v699_v11 = vld [vmem:[%s1380_s1 + $0xc0] sm:$0xf] }
   0x4   :  { %410 = vmatpush.bf16.msra.mxu0 %v716_v3  ;;  %v848_v12 = vor.u32 %v919_v9, %v845_v10  ;;  %v885_v13 = vld [vmem:[%s1380_s1 + $0xcc] sm:$0xf0]  ;;  %v827_v14 = vld [vmem:[%s1380_s1 + $0x1c0] sm:$0xf]  ;;  %v883_v18 = vld [vmem:[%s1380_s1 + $0xc4] sm:$0xf] }
   0x5   :  { %v917_v15 = vld [vmem:[%s1380_s1 + $0x1cc] sm:$0xf0]  ;;  %424 = vmatpush.bf16.msra.mxu1 %v844_v7  ;;  %438 = vmatpush.bf16.msra.mxu2 %v720_v8  ;;  %v700_v16 = vor.u32 %v885_v13, %v699_v11  ;;  %v701_v19 = vld [vmem:[%s1380_s1 + $0xd0] sm:$0xf0]  ;;  %v915_v20 = vld [vmem:[%s1380_s1 + $0x1c4] sm:$0xf] }
   0x6   :  { %v828_v17 = vor.u32 %v917_v15, %v827_v14  ;;  %452 = vmatpush.bf16.msra.mxu3 %v848_v12  ;;  %v704_v21 = vor.u32 %v883_v18, %v701_v19  ;;  %v829_v22 = vld [vmem:[%s1380_s1 + $0x1d0] sm:$0xf0]  ;;  %v683_v23 = vld [vmem:[%s1380_s1 + $0xa0] sm:$0xf]  ;;  %v881_v24 = vld [vmem:[%s1380_s1 + $0xac] sm:$0xf0] }
   0x7   :  { %v832_v25 = vor.u32 %v915_v20, %v829_v22  ;;  %v811_v26 = vld [vmem:[%s1380_s1 + $0x1a0] sm:$0xf]  ;;  %v913_v27 = vld [vmem:[%s1380_s1 + $0x1ac] sm:$0xf0]  ;;  %v879_v28 = vld [vmem:[%s1380_s1 + $0xa4] sm:$0xf]  ;;  %v684_v29 = vor.u32 %v881_v24, %v683_v23 }
   0x8   :  { %411 = vmatpush.bf16.msra.mxu0 %v700_v16  ;;  %v685_v30 = vld [vmem:[%s1380_s1 + $0xb0] sm:$0xf0]  ;;  %v911_v31 = vld [vmem:[%s1380_s1 + $0x1a4] sm:$0xf]  ;;  %v812_v33 = vor.u32 %v913_v27, %v811_v26  ;;  %v667_v35 = vld [vmem:[%s1380_s1 + $0x80] sm:$0xf] }
   0x9   :  { %v813_v32 = vld [vmem:[%s1380_s1 + $0x1b0] sm:$0xf0]  ;;  %425 = vmatpush.bf16.msra.mxu1 %v828_v17  ;;  %439 = vmatpush.bf16.msra.mxu2 %v704_v21  ;;  %v688_v34 = vor.u32 %v879_v28, %v685_v30  ;;  %v877_v36 = vld [vmem:[%s1380_s1 + $0x8c] sm:$0xf0]  ;;  %v795_v37 = vld [vmem:[%s1380_s1 + $0x180] sm:$0xf] }
   0xa   :  { %453 = vmatpush.bf16.msra.mxu3 %v832_v25  ;;  %v816_v38 = vor.u32 %v911_v31, %v813_v32  ;;  %v909_v39 = vld [vmem:[%s1380_s1 + $0x18c] sm:$0xf0]  ;;  %v875_v40 = vld [vmem:[%s1380_s1 + $0x84] sm:$0xf]  ;;  %v669_v41 = vld [vmem:[%s1380_s1 + $0x90] sm:$0xf0]  ;;  %v668_v44 = vor.u32 %v877_v36, %v667_v35 }
   0xb   :  { %v907_v42 = vld [vmem:[%s1380_s1 + $0x184] sm:$0xf]  ;;  %v797_v43 = vld [vmem:[%s1380_s1 + $0x190] sm:$0xf0]  ;;  %v796_v45 = vor.u32 %v909_v39, %v795_v37  ;;  %v672_v46 = vor.u32 %v875_v40, %v669_v41  ;;  %v651_v47 = vld [vmem:[%s1380_s1 + $0x60] sm:$0xf] }
   0xc   :  { %412 = vmatpush.bf16.msra.mxu0 %v684_v29  ;;  %v873_v48 = vld [vmem:[%s1380_s1 + $0x6c] sm:$0xf0]  ;;  %v779_v49 = vld [vmem:[%s1380_s1 + $0x160] sm:$0xf]  ;;  %v800_v50 = vor.u32 %v907_v42, %v797_v43  ;;  %v871_v52 = vld [vmem:[%s1380_s1 + $0x64] sm:$0xf] }
   0xd   :  { %426 = vmatpush.bf16.msra.mxu1 %v812_v33  ;;  %440 = vmatpush.bf16.msra.mxu2 %v688_v34  ;;  %v905_v51 = vld [vmem:[%s1380_s1 + $0x16c] sm:$0xf0]  ;;  %v653_v53 = vld [vmem:[%s1380_s1 + $0x70] sm:$0xf0]  ;;  %v903_v54 = vld [vmem:[%s1380_s1 + $0x164] sm:$0xf]  ;;  %v652_v56 = vor.u32 %v873_v48, %v651_v47 }
   0xe   :  { %454 = vmatpush.bf16.msra.mxu3 %v816_v38  ;;  %v781_v55 = vld [vmem:[%s1380_s1 + $0x170] sm:$0xf0]  ;;  %v780_v57 = vor.u32 %v905_v51, %v779_v49  ;;  %v656_v58 = vor.u32 %v871_v52, %v653_v53  ;;  %v635_v59 = vld [vmem:[%s1380_s1 + $0x40] sm:$0xf]  ;;  %v869_v60 = vld [vmem:[%s1380_s1 + $0x4c] sm:$0xf0] }
   0xf   :  { %v763_v61 = vld [vmem:[%s1380_s1 + $0x140] sm:$0xf]  ;;  %v784_v62 = vor.u32 %v903_v54, %v781_v55  ;;  %v901_v63 = vld [vmem:[%s1380_s1 + $0x14c] sm:$0xf0]  ;;  %v867_v0 = vld [vmem:[%s1380_s1 + $0x44] sm:$0xf]  ;;  %v636_v4 = vor.u32 %v869_v60, %v635_v59 }
  0x10   :  { %413 = vmatpush.bf16.msra.mxu0 %v668_v44  ;;  %v637_v1 = vld [vmem:[%s1380_s1 + $0x50] sm:$0xf0]  ;;  %v899_v2 = vld [vmem:[%s1380_s1 + $0x144] sm:$0xf]  ;;  %v764_v5 = vor.u32 %v901_v63, %v763_v61  ;;  %v619_v7 = vld [vmem:[%s1380_s1 + $0x20] sm:$0xf] }
  0x11   :  { %427 = vmatpush.bf16.msra.mxu1 %v796_v45  ;;  %441 = vmatpush.bf16.msra.mxu2 %v672_v46  ;;  %v765_v3 = vld [vmem:[%s1380_s1 + $0x150] sm:$0xf0]  ;;  %v640_v6 = vor.u32 %v867_v0, %v637_v1  ;;  %v865_v8 = vld [vmem:[%s1380_s1 + $0x2c] sm:$0xf0]  ;;  %v747_v9 = vld [vmem:[%s1380_s1 + $0x120] sm:$0xf] }
  0x12   :  { %455 = vmatpush.bf16.msra.mxu3 %v800_v50  ;;  %v768_v10 = vor.u32 %v899_v2, %v765_v3  ;;  %v897_v11 = vld [vmem:[%s1380_s1 + $0x12c] sm:$0xf0]  ;;  %v863_v12 = vld [vmem:[%s1380_s1 + $0x24] sm:$0xf]  ;;  %v621_v13 = vld [vmem:[%s1380_s1 + $0x30] sm:$0xf0]  ;;  %v620_v16 = vor.u32 %v865_v8, %v619_v7 }
  0x13   :  { %v895_v14 = vld [vmem:[%s1380_s1 + $0x124] sm:$0xf]  ;;  %v749_v15 = vld [vmem:[%s1380_s1 + $0x130] sm:$0xf0]  ;;  %v603_v17 = vld [vmem:[%s1380_s1] sm:$0xf]  ;;  %v748_v20 = vor.u32 %v897_v11, %v747_v9  ;;  %v624_v21 = vor.u32 %v863_v12, %v621_v13 }
  0x14   :  { %414 = vmatpush.bf16.msra.mxu0 %v652_v56  ;;  %v861_v18 = vld [vmem:[%s1380_s1 + $0xc] sm:$0xf0]  ;;  %v731_v19 = vld [vmem:[%s1380_s1 + $0x100] sm:$0xf]  ;;  %v859_v23 = vld [vmem:[%s1380_s1 + $0x4] sm:$0xf]  ;;  %v752_v25 = vor.u32 %v895_v14, %v749_v15 }
  0x15   :  { %428 = vmatpush.bf16.msra.mxu1 %v780_v57  ;;  %442 = vmatpush.bf16.msra.mxu2 %v656_v58  ;;  %v893_v22 = vld [vmem:[%s1380_s1 + $0x10c] sm:$0xf0]  ;;  %v605_v24 = vld [vmem:[%s1380_s1 + $0x10] sm:$0xf0]  ;;  %v891_v26 = vld [vmem:[%s1380_s1 + $0x104] sm:$0xf]  ;;  %v604_v32 = vor.u32 %v861_v18, %v603_v17 }
  0x16   :  { %456 = vmatpush.bf16.msra.mxu3 %v784_v62  ;;  %v733_v27 = vld [vmem:[%s1380_s1 + $0x110] sm:$0xf0]  ;;  %v723_v28 = vld [vmem:[%s1380_s1 + $0xe8] sm:$0xf]  ;;  %v890_v29 = vld [vmem:[%s1380_s1 + $0xf4] sm:$0xf0]  ;;  %v732_v36 = vor.u32 %v893_v22, %v731_v19  ;;  %v608_v37 = vor.u32 %v859_v23, %v605_v24 }
  0x17   :  { %v851_v30 = vld [vmem:[%s1380_s1 + $0x1e8] sm:$0xf]  ;;  %v922_v31 = vld [vmem:[%s1380_s1 + $0x1f4] sm:$0xf0]  ;;  %v888_v33 = vld [vmem:[%s1380_s1 + $0xec] sm:$0xf]  ;;  %v736_v41 = vor.u32 %v891_v26, %v733_v27  ;;  %v724_v42 = vor.u32 %v890_v29, %v723_v28 }
  0x18   :  { %415 = vmatpush.bf16.msra.mxu0 %v636_v4  ;;  %v725_v34 = vld [vmem:[%s1380_s1 + $0xf8] sm:$0xf0]  ;;  %v920_v35 = vld [vmem:[%s1380_s1 + $0x1ec] sm:$0xf]  ;;  %v595_v39 = vld [vmem:[%s1381_s0] sm:$0xf]  ;;  %v852_v45 = vor.u32 %v922_v31, %v851_v30 }
  0x19   :  { %429 = vmatpush.bf16.msra.mxu1 %v764_v5  ;;  %443 = vmatpush.bf16.msra.mxu2 %v640_v6  ;;  %v853_v38 = vld [vmem:[%s1380_s1 + $0x1f8] sm:$0xf0]  ;;  %v858_v40 = vld [vmem:[%s1381_s0 + $0x4] sm:$0xf0]  ;;  %v857_v43 = vld [vmem:[%s1381_s0 + $0x4] sm:$0xf]  ;;  %v728_v46 = vor.u32 %v888_v33, %v725_v34 }
  0x1a   :  { %457 = vmatpush.bf16.msra.mxu3 %v768_v10  ;;  %v597_v44 = vld [vmem:[%s1381_s0 + $0x8] sm:$0xf0]  ;;  %v707_v47 = vld [vmem:[%s1380_s1 + $0xc8] sm:$0xf]  ;;  %v886_v48 = vld [vmem:[%s1380_s1 + $0xd4] sm:$0xf0]  ;;  %v856_v50 = vor.u32 %v920_v35, %v853_v38  ;;  %v1194_v54 = vor.u32 %v858_v40, %v595_v39 }
  0x1b   :  { %v835_v49 = vld [vmem:[%s1380_s1 + $0x1c8] sm:$0xf]  ;;  %v918_v51 = vld [vmem:[%s1380_s1 + $0x1d4] sm:$0xf0]  ;;  %v884_v52 = vld [vmem:[%s1380_s1 + $0xcc] sm:$0xf]  ;;  %v1202_v57 = vor.u32 %v857_v43, %v597_v44  ;;  %v708_v58 = vor.u32 %v886_v48, %v707_v47 }
  0x1c   :  { %416 = vmatpush.bf16.msra.mxu0 %v620_v16  ;;  %v709_v53 = vld [vmem:[%s1380_s1 + $0xd8] sm:$0xf0]  ;;  %v916_v55 = vld [vmem:[%s1380_s1 + $0x1cc] sm:$0xf]  ;;  %v836_v59 = vor.u32 %v918_v51, %v835_v49  ;;  %v691_v61 = vld [vmem:[%s1380_s1 + $0xa8] sm:$0xf] }
  0x1d   :  { %430 = vmatpush.bf16.msra.mxu1 %v748_v20  ;;  %444 = vmatpush.bf16.msra.mxu2 %v624_v21  ;;  %v837_v56 = vld [vmem:[%s1380_s1 + $0x1d8] sm:$0xf0]  ;;  %v712_v60 = vor.u32 %v884_v52, %v709_v53  ;;  %v882_v62 = vld [vmem:[%s1380_s1 + $0xb4] sm:$0xf0]  ;;  %v819_v63 = vld [vmem:[%s1380_s1 + $0x1a8] sm:$0xf] }
  0x1e   :  { %458 = vmatpush.bf16.msra.mxu3 %v752_v25  ;;  %v840_v0 = vor.u32 %v916_v55, %v837_v56  ;;  %v914_v1 = vld [vmem:[%s1380_s1 + $0x1b4] sm:$0xf0]  ;;  %v880_v2 = vld [vmem:[%s1380_s1 + $0xac] sm:$0xf]  ;;  %v693_v3 = vld [vmem:[%s1380_s1 + $0xb8] sm:$0xf0]  ;;  %v692_v6 = vor.u32 %v882_v62, %v691_v61 }
  0x1f   :  { %v912_v4 = vld [vmem:[%s1380_s1 + $0x1ac] sm:$0xf]  ;;  %v821_v5 = vld [vmem:[%s1380_s1 + $0x1b8] sm:$0xf0]  ;;  %v820_v7 = vor.u32 %v914_v1, %v819_v63  ;;  %v696_v8 = vor.u32 %v880_v2, %v693_v3  ;;  %v675_v9 = vld [vmem:[%s1380_s1 + $0x88] sm:$0xf] }
  0x20   :  { %417 = vmatpush.bf16.msra.mxu0 %v604_v32  ;;  %v878_v10 = vld [vmem:[%s1380_s1 + $0x94] sm:$0xf0]  ;;  %v803_v11 = vld [vmem:[%s1380_s1 + $0x188] sm:$0xf]  ;;  %v824_v12 = vor.u32 %v912_v4, %v821_v5  ;;  %v876_v14 = vld [vmem:[%s1380_s1 + $0x8c] sm:$0xf] }
  0x21   :  { %431 = vmatpush.bf16.msra.mxu1 %v732_v36  ;;  %445 = vmatpush.bf16.msra.mxu2 %v608_v37  ;;  %v910_v13 = vld [vmem:[%s1380_s1 + $0x194] sm:$0xf0]  ;;  %v677_v15 = vld [vmem:[%s1380_s1 + $0x98] sm:$0xf0]  ;;  %v908_v16 = vld [vmem:[%s1380_s1 + $0x18c] sm:$0xf]  ;;  %v676_v18 = vor.u32 %v878_v10, %v675_v9 }
  0x22   :  { %459 = vmatpush.bf16.msra.mxu3 %v736_v41  ;;  %v805_v17 = vld [vmem:[%s1380_s1 + $0x198] sm:$0xf0]  ;;  %v804_v19 = vor.u32 %v910_v13, %v803_v11  ;;  %v680_v20 = vor.u32 %v876_v14, %v677_v15  ;;  %v659_v21 = vld [vmem:[%s1380_s1 + $0x68] sm:$0xf]  ;;  %v874_v22 = vld [vmem:[%s1380_s1 + $0x74] sm:$0xf0] }
  0x23   :  { %418 = vmatmul.bf16.vlgmr.msra.gmra.mxu0 %v1194_v54  ;;  %v787_v23 = vld [vmem:[%s1380_s1 + $0x168] sm:$0xf]  ;;  %v808_v24 = vor.u32 %v908_v16, %v805_v17  ;;  %v906_v25 = vld [vmem:[%s1380_s1 + $0x174] sm:$0xf0]  ;;  %v872_v26 = vld [vmem:[%s1380_s1 + $0x6c] sm:$0xf]  ;;  %v660_v30 = vor.u32 %v874_v22, %v659_v21 }
  0x24   :  { %466 = vmatpush.bf16.msrb.mxu0 %v724_v42  ;;  %446 = vmatmul.bf16.vlgmr.msra.gmra.mxu2 %v1194_v54  ;;  %v661_v27 = vld [vmem:[%s1380_s1 + $0x78] sm:$0xf0]  ;;  %v904_v28 = vld [vmem:[%s1380_s1 + $0x16c] sm:$0xf]  ;;  %v788_v31 = vor.u32 %v906_v25, %v787_v23  ;;  %v643_v33 = vld [vmem:[%s1380_s1 + $0x48] sm:$0xf] }
  0x25   :  { %480 = vmatpush.bf16.msrb.mxu1 %v852_v45  ;;  %494 = vmatpush.bf16.msrb.mxu2 %v728_v46  ;;  %v789_v29 = vld [vmem:[%s1380_s1 + $0x178] sm:$0xf0]  ;;  %v664_v32 = vor.u32 %v872_v26, %v661_v27  ;;  %v870_v34 = vld [vmem:[%s1380_s1 + $0x54] sm:$0xf0]  ;;  %v771_v35 = vld [vmem:[%s1380_s1 + $0x148] sm:$0xf] }
  0x26   :  { %508 = vmatpush.bf16.msrb.mxu3 %v856_v50  ;;  %432 = vmatmul.bf16.vlgmr.msra.gmra.mxu1 %v1202_v57  ;;  %v792_v36 = vor.u32 %v904_v28, %v789_v29  ;;  %v902_v37 = vld [vmem:[%s1380_s1 + $0x154] sm:$0xf0]  ;;  %v868_v38 = vld [vmem:[%s1380_s1 + $0x4c] sm:$0xf]  ;;  %v645_v39 = vld [vmem:[%s1380_s1 + $0x58] sm:$0xf0]  ;;  %v644_v42 = vor.u32 %v870_v34, %v643_v33 }
  0x27   :  { %460 = vmatmul.bf16.vlgmr.msra.gmra.mxu3 %v1202_v57  ;;  %v900_v40 = vld [vmem:[%s1380_s1 + $0x14c] sm:$0xf]  ;;  %v773_v41 = vld [vmem:[%s1380_s1 + $0x158] sm:$0xf0]  ;;  %v772_v43 = vor.u32 %v902_v37, %v771_v35  ;;  %v648_v44 = vor.u32 %v868_v38, %v645_v39  ;;  %v627_v45 = vld [vmem:[%s1380_s1 + $0x28] sm:$0xf] }
  0x28   :  { %467 = vmatpush.bf16.msrb.mxu0 %v708_v58  ;;  %v866_v46 = vld [vmem:[%s1380_s1 + $0x34] sm:$0xf0]  ;;  %v755_v47 = vld [vmem:[%s1380_s1 + $0x128] sm:$0xf]  ;;  %v776_v48 = vor.u32 %v900_v40, %v773_v41  ;;  %v864_v50 = vld [vmem:[%s1380_s1 + $0x2c] sm:$0xf] }
  0x29   :  { %481 = vmatpush.bf16.msrb.mxu1 %v836_v59  ;;  %495 = vmatpush.bf16.msrb.mxu2 %v712_v60  ;;  %v898_v49 = vld [vmem:[%s1380_s1 + $0x134] sm:$0xf0]  ;;  %v629_v51 = vld [vmem:[%s1380_s1 + $0x38] sm:$0xf0]  ;;  %v896_v52 = vld [vmem:[%s1380_s1 + $0x12c] sm:$0xf]  ;;  %v628_v55 = vor.u32 %v866_v46, %v627_v45 }
  0x2a   :  { %509 = vmatpush.bf16.msrb.mxu3 %v840_v0  ;;  %v757_v53 = vld [vmem:[%s1380_s1 + $0x138] sm:$0xf0]  ;;  %v756_v56 = vor.u32 %v898_v49, %v755_v47  ;;  %v632_v58 = vor.u32 %v864_v50, %v629_v51  ;;  %v611_v59 = vld [vmem:[%s1380_s1 + $0x8] sm:$0xf]  ;;  %v862_v60 = vld [vmem:[%s1380_s1 + $0x14] sm:$0xf0] }
  0x2b   :  { %v739_v61 = vld [vmem:[%s1380_s1 + $0x108] sm:$0xf]  ;;  %v760_v62 = vor.u32 %v896_v52, %v757_v53  ;;  %v894_v63 = vld [vmem:[%s1380_s1 + $0x114] sm:$0xf0]  ;;  %v860_v0 = vld [vmem:[%s1380_s1 + $0xc] sm:$0xf]  ;;  %v612_v4 = vor.u32 %v862_v60, %v611_v59 }
  0x2c   :  { %468 = vmatpush.bf16.msrb.mxu0 %v692_v6  ;;  %v613_v1 = vld [vmem:[%s1380_s1 + $0x18] sm:$0xf0]  ;;  %v892_v2 = vld [vmem:[%s1380_s1 + $0x10c] sm:$0xf]  ;;  %v740_v5 = vor.u32 %v894_v63, %v739_v61 }
  0x2d   :  { %482 = vmatpush.bf16.msrb.mxu1 %v820_v7  ;;  %496 = vmatpush.bf16.msrb.mxu2 %v696_v8  ;;  %v741_v3 = vld [vmem:[%s1380_s1 + $0x118] sm:$0xf0]  ;;  %v616_v6 = vor.u32 %v860_v0, %v613_v1 }
  0x2e   :  { %510 = vmatpush.bf16.msrb.mxu3 %v824_v12  ;;  %v744_v7 = vor.u32 %v892_v2, %v741_v3 }
  0x30   :  { %469 = vmatpush.bf16.msrb.mxu0 %v676_v18 }
  0x31   :  { %483 = vmatpush.bf16.msrb.mxu1 %v804_v19  ;;  %497 = vmatpush.bf16.msrb.mxu2 %v680_v20 }
  0x32   :  { %511 = vmatpush.bf16.msrb.mxu3 %v808_v24 }
  0x34   :  { %470 = vmatpush.bf16.msrb.mxu0 %v660_v30 }
  0x35   :  { %484 = vmatpush.bf16.msrb.mxu1 %v788_v31  ;;  %498 = vmatpush.bf16.msrb.mxu2 %v664_v32 }
  0x36   :  { %512 = vmatpush.bf16.msrb.mxu3 %v792_v36 }
  0x38   :  { %471 = vmatpush.bf16.msrb.mxu0 %v644_v42 }
  0x39   :  { %485 = vmatpush.bf16.msrb.mxu1 %v772_v43  ;;  %499 = vmatpush.bf16.msrb.mxu2 %v648_v44 }
  0x3a   :  { %513 = vmatpush.bf16.msrb.mxu3 %v776_v48 }
  0x3c   :  { %472 = vmatpush.bf16.msrb.mxu0 %v628_v55 }
  0x3d   :  { %486 = vmatpush.bf16.msrb.mxu1 %v756_v56  ;;  %500 = vmatpush.bf16.msrb.mxu2 %v632_v58 }
  0x3e   :  { %514 = vmatpush.bf16.msrb.mxu3 %v760_v62 }
  0x40   :  { %473 = vmatpush.bf16.msrb.mxu0 %v612_v4 }
  0x41   :  { %487 = vmatpush.bf16.msrb.mxu1 %v740_v5  ;;  %501 = vmatpush.bf16.msrb.mxu2 %v616_v6 }
  0x42   :  { %515 = vmatpush.bf16.msrb.mxu3 %v744_v7 }
  0x43   :  { %474 = vmatmul.bf16.vlgmr.msrb.gmra.mxu0 %v1194_v54 }
  0x44   :  { %488 = vmatmul.bf16.vlgmr.msrb.gmra.mxu1 %v1202_v57  ;;  %502 = vmatmul.bf16.vlgmr.msrb.gmra.mxu2 %v1194_v54 }
  0x45   :  { %516 = vmatmul.bf16.vlgmr.msrb.gmra.mxu3 %v1202_v57 }
  0xa0   :  { %v419_v8 = vpop.f32.mrf.mxu0 }
  0xa3   :  { %v433_v9 = vpop.f32.mrf.mxu1 }
  0xa4   :  { %v434_v10 = vadd.f32 %v433_v9, %v419_v8 }
  0xa6   :  { %v544_v23 = vmul.f32 %v434_v10, %v434_v10 }
  0xa7   :  { %v447_v11 = vpop.f32.mrf.mxu2 }
  0xa8   :  { %v421_v15 = vpop.f32.mrf.mxu0 }
  0xaa   :  { %v461_v12 = vpop.f32.mrf.mxu3 }
  0xab   :  { %v462_v13 = vadd.f32 %v461_v12, %v447_v11  ;;  %v435_v16 = vpop.f32.mrf.mxu1 }
  0xac   :  { %v436_v17 = vadd.f32 %v435_v16, %v421_v15 }
  0xad   :  { %v522_v14 = vpack.c.bf16 %v462_v13, %v434_v10  ;;  %v550_v24 = vmul.f32 %v462_v13, %v462_v13  ;;  %v548_v26 = vadd.f32 %v462_v13, %v434_v10 }
  0xae   :  { %v545_v39 = vmul.f32 %v436_v17, %v436_v17 }
  0xaf   :  { %526 = vst [vmem:[%s1382_s2] sm:$0xff] %v522_v14  ;;  %v449_v18 = vpop.f32.mrf.mxu2  ;;  %v552_v28 = vadd.f32 %v550_v24, %v544_v23 }
  0xb2   :  { %v463_v19 = vpop.f32.mrf.mxu3 }
  0xb3   :  { %v464_v20 = vadd.f32 %v463_v19, %v449_v18 }
  0xb5   :  { %v524_v54 = vpack.c.bf16 %v464_v20, %v436_v17  ;;  %v551_v40 = vmul.f32 %v464_v20, %v464_v20  ;;  %v549_v42 = vadd.f32 %v464_v20, %v436_v17 }
  0xb7   :  { %528 = vst [vmem:[%s1382_s2 + $0x10] sm:$0xff] %v524_v54  ;;  %v553_v46 = vadd.f32 %v551_v40, %v545_v39 }
  0xc0   :  { %v475_v57 = vpop.f32.mrf.mxu0 }
  0xc1   :  { %v489_v21 = vpop.f32.mrf.mxu1 }
  0xc2   :  { %v490_v22 = vadd.f32 %v489_v21, %v475_v57 }
  0xc4   :  { %v556_v25 = vmul.f32 %v490_v22, %v490_v22  ;;  %v554_v31 = vadd.f32 %v548_v26, %v490_v22 }
  0xc6   :  { %v558_v34 = vadd.f32 %v556_v25, %v552_v28 }
  0xc7   :  { %v503_v27 = vpop.f32.mrf.mxu2 }
  0xc8   :  { %v517_v29 = vpop.f32.mrf.mxu3  ;;  %v477_v30 = vpop.f32.mrf.mxu0 }
  0xc9   :  { %v518_v32 = vadd.f32 %v517_v29, %v503_v27  ;;  %v491_v33 = vpop.f32.mrf.mxu1 }
  0xca   :  { %v492_v38 = vadd.f32 %v491_v33, %v477_v30 }
  0xcb   :  { %v523_v35 = vpack.c.bf16 %v518_v32, %v490_v22  ;;  %v560_v36 = vadd.f32 %v554_v31, %v518_v32  ;;  %v562_v37 = vmul.f32 %v518_v32, %v518_v32 }
  0xcc   :  { %v557_v43 = vmul.f32 %v492_v38, %v492_v38  ;;  %v555_v47 = vadd.f32 %v549_v42, %v492_v38 }
  0xcd   :  { %527 = vst [vmem:[%s1382_s2 + $0x8] sm:$0xff] %v523_v35  ;;  %v564_v41 = vadd.f32 %v562_v37, %v558_v34 }
  0xce   :  { %575 = vst [vmem:[%s1383_s3] sm:$0xff] %v560_v36  ;;  %v559_v49 = vadd.f32 %v557_v43, %v553_v46 }
  0xcf   :  { %579 = vst [vmem:[%s1384_s4] sm:$0xff] %v564_v41  ;;  %v505_v44 = vpop.f32.mrf.mxu2 }
  0xd0   :  { %v519_v45 = vpop.f32.mrf.mxu3 }
  0xd1   :  { %v520_v48 = vadd.f32 %v519_v45, %v505_v44 }
  0xd3   :  { %v525_v50 = vpack.c.bf16 %v520_v48, %v492_v38  ;;  %v561_v51 = vadd.f32 %v555_v47, %v520_v48  ;;  %v563_v52 = vmul.f32 %v520_v48, %v520_v48 }
  0xd5   :  { %529 = vst [vmem:[%s1382_s2 + $0x18] sm:$0xff] %v525_v50  ;;  %v565_v53 = vadd.f32 %v563_v52, %v559_v49 }
  0xd6   :  { %576 = vst [vmem:[%s1383_s3 + $0x8] sm:$0xff] %v561_v51 }
  0xd7   :  { %580 = vst [vmem:[%s1384_s4 + $0x8] sm:$0xff] %v565_v53 }

</bundles_post_ra>
